<compile_context>
chip_gen: v5e
topology: v5e:2x2
jax: 0.10.0
libtpu: 0.0.40
codegen_flags: <defaults>
</compile_context>

<pallas_src>
import functools

import jax
import jax.numpy as jnp
from jax.experimental import pallas as pl
from jax.experimental.pallas import tpu as pltpu


_BN_EPS = 1e-5
_MOSAIC_PARAMS = pltpu.CompilerParams(
    dimension_semantics=("parallel", "parallel", "arbitrary"),
    vmem_limit_bytes=48 * 1024 * 1024,
)


# --------------------------------------------------------------------------
# Pallas kernels: fused MXU matmuls with fp32 VMEM accumulator over the K grid
# --------------------------------------------------------------------------
def _mm_bn_relu_kernel(a_ref, w_ref, scale_ref, shift_ref, o_ref, acc_ref):
    """acc += a @ w over K; epilogue relu(acc*scale+shift) stored as bf16."""
    k = pl.program_id(2)

    @pl.when(k == 0)
    def _():
        acc_ref[...] = jnp.zeros_like(acc_ref)

    acc_ref[...] += jnp.dot(a_ref[...], w_ref[...],
                            preferred_element_type=jnp.float32)

    @pl.when(k == pl.num_programs(2) - 1)
    def _():
        y = jnp.maximum(acc_ref[...] * scale_ref[...] + shift_ref[...], 0.0)
        o_ref[...] = y.astype(o_ref.dtype)


def _mm_add_kernel(a_ref, w_ref, res_ref, o_ref, acc_ref):
    """acc = res; acc += a @ w over K; stored as bf16 (identity residual)."""
    k = pl.program_id(2)

    @pl.when(k == 0)
    def _():
        acc_ref[...] = res_ref[...].astype(jnp.float32)

    acc_ref[...] += jnp.dot(a_ref[...], w_ref[...],
                            preferred_element_type=jnp.float32)

    @pl.when(k == pl.num_programs(2) - 1)
    def _():
        o_ref[...] = acc_ref[...].astype(o_ref.dtype)


def _mm_shortcut_kernel(a_ref, w_ref, asc_ref, wsc_ref, o_ref, acc_ref):
    """acc = asc @ wsc (1x1 shortcut); acc += a @ w over K; stored as bf16."""
    k = pl.program_id(2)

    @pl.when(k == 0)
    def _():
        acc_ref[...] = jnp.dot(asc_ref[...], wsc_ref[...],
                               preferred_element_type=jnp.float32)

    acc_ref[...] += jnp.dot(a_ref[...], w_ref[...],
                            preferred_element_type=jnp.float32)

    @pl.when(k == pl.num_programs(2) - 1)
    def _():
        o_ref[...] = acc_ref[...].astype(o_ref.dtype)


# --------------------------------------------------------------------------
# Tiling helpers
# --------------------------------------------------------------------------
def _round_up(x, m):
    return ((x + m - 1) // m) * m


def _pick_m_tiling(M, target=512):
    """M tile (multiple of 16 for bf16 sublane packing) + padded M.

    Guarantees >=2 grid steps whenever M allows it so the 'parallel' M axis
    actually shards across both v7x TensorCores, and never returns a huge
    unaligned full-M block (rows are zero-padded and sliced off instead)."""
    M16 = _round_up(max(M, 1), 16)
    steps = max(2 if M16 >= 32 else 1, pl.cdiv(M16, target))
    tm = _round_up(pl.cdiv(M16, steps), 16)
    Mp = _round_up(M16, tm)
    return tm, Mp


def _pick_div_tile(dim, target, mult=128):
    """Largest multiple of `mult` that divides `dim` and is <= target; else full dim."""
    if dim <= target:
        return dim
    t = (target // mult) * mult
    while t >= mult:
        if dim % t == 0:
            return t
        t -= mult
    return dim


def _pad_rows(a, rows):
    if a.shape[0] == rows:
        return a
    return jnp.pad(a, ((0, rows - a.shape[0]), (0, 0)))


# --------------------------------------------------------------------------
# Pallas wrappers
# --------------------------------------------------------------------------
def pallas_matmul_bn_relu(a, w, scale, shift):
    """relu((a @ w) * scale + shift) — BN(eval)+ReLU fused in the MXU epilogue."""
    M, K = a.shape
    N = w.shape[1]
    tm, Mp = _pick_m_tiling(M)
    tn = _pick_div_tile(N, 256)
    tk = _pick_div_tile(K, 1024)
    a = _pad_rows(a, Mp)
    cost = pl.CostEstimate(flops=2 * Mp * K * N, transcendentals=0,
                           bytes_accessed=2 * (Mp * K + K * N + Mp * N))
    out = pl.pallas_call(
        _mm_bn_relu_kernel,
        out_shape=jax.ShapeDtypeStruct((Mp, N), jnp.bfloat16),
        grid=(Mp // tm, N // tn, K // tk),
        in_specs=[pl.BlockSpec((tm, tk), lambda i, j, k: (i, k)),
                  pl.BlockSpec((tk, tn), lambda i, j, k: (k, j)),
                  pl.BlockSpec((1, tn), lambda i, j, k: (0, j)),
                  pl.BlockSpec((1, tn), lambda i, j, k: (0, j))],
        out_specs=pl.BlockSpec((tm, tn), lambda i, j, k: (i, j)),
        scratch_shapes=[pltpu.VMEM((tm, tn), jnp.float32)],
        compiler_params=_MOSAIC_PARAMS,
        cost_estimate=cost,
    )(a, w, scale.reshape(1, N).astype(jnp.float32),
      shift.reshape(1, N).astype(jnp.float32))
    return out[:M] if Mp != M else out


def pallas_matmul_add(a, w, res):
    """(a @ w) + res — identity residual seeded into the VMEM accumulator."""
    M, K = a.shape
    N = w.shape[1]
    tm, Mp = _pick_m_tiling(M)
    tn = _pick_div_tile(N, 256)
    tk = _pick_div_tile(K, 1024)
    a = _pad_rows(a, Mp)
    res = _pad_rows(res.astype(jnp.bfloat16), Mp)
    cost = pl.CostEstimate(flops=2 * Mp * K * N, transcendentals=0,
                           bytes_accessed=2 * (Mp * K + K * N + 2 * Mp * N))
    out = pl.pallas_call(
        _mm_add_kernel,
        out_shape=jax.ShapeDtypeStruct((Mp, N), jnp.bfloat16),
        grid=(Mp // tm, N // tn, K // tk),
        in_specs=[pl.BlockSpec((tm, tk), lambda i, j, k: (i, k)),
                  pl.BlockSpec((tk, tn), lambda i, j, k: (k, j)),
                  pl.BlockSpec((tm, tn), lambda i, j, k: (i, j))],
        out_specs=pl.BlockSpec((tm, tn), lambda i, j, k: (i, j)),
        scratch_shapes=[pltpu.VMEM((tm, tn), jnp.float32)],
        compiler_params=_MOSAIC_PARAMS,
        cost_estimate=cost,
    )(a, w, res)
    return out[:M] if Mp != M else out


def pallas_matmul_shortcut(a, w, asc, wsc):
    """(a @ w) + (asc @ wsc) — 1x1 shortcut folded in as a second operand pair
    accumulated into the same VMEM scratch (no HBM concat)."""
    M, K = a.shape
    N = w.shape[1]
    Csc = asc.shape[1]
    tm, Mp = _pick_m_tiling(M)
    tn = _pick_div_tile(N, 256)
    tk = _pick_div_tile(K, 1024)
    a = _pad_rows(a, Mp)
    asc = _pad_rows(asc, Mp)
    cost = pl.CostEstimate(
        flops=2 * Mp * (K + Csc) * N, transcendentals=0,
        bytes_accessed=2 * (Mp * K + K * N + Mp * Csc + Csc * N + Mp * N))
    out = pl.pallas_call(
        _mm_shortcut_kernel,
        out_shape=jax.ShapeDtypeStruct((Mp, N), jnp.bfloat16),
        grid=(Mp // tm, N // tn, K // tk),
        in_specs=[pl.BlockSpec((tm, tk), lambda i, j, k: (i, k)),
                  pl.BlockSpec((tk, tn), lambda i, j, k: (k, j)),
                  pl.BlockSpec((tm, Csc), lambda i, j, k: (i, 0)),
                  pl.BlockSpec((Csc, tn), lambda i, j, k: (0, j))],
        out_specs=pl.BlockSpec((tm, tn), lambda i, j, k: (i, j)),
        scratch_shapes=[pltpu.VMEM((tm, tn), jnp.float32)],
        compiler_params=_MOSAIC_PARAMS,
        cost_estimate=cost,
    )(a, w, asc, wsc)
    return out[:M] if Mp != M else out


# --------------------------------------------------------------------------
# Conv helpers (JAX glue around the fused Pallas matmul kernels)
# --------------------------------------------------------------------------
def _im2col(x, ksize, stride, padding):
    # x: (B, H, W, C) bf16 -> (B*Ho*Wo, ksize*ksize*C), patch order (kh, kw, C).
    # TODO(synk): replace with an in-kernel tap-reduction (shifted-window reads)
    # to avoid materializing the 9x-expanded activation at all.
    B, H, W, C = x.shape
    xp = jnp.pad(x, ((0, 0), (padding, padding), (padding, padding), (0, 0)))
    Ho = (H + 2 * padding - ksize) // stride + 1
    Wo = (W + 2 * padding - ksize) // stride + 1
    cols = [xp[:, di:di + stride * Ho:stride, dj:dj + stride * Wo:stride, :]
            for di in range(ksize) for dj in range(ksize)]
    a = jnp.concatenate(cols, axis=-1).reshape(B * Ho * Wo, ksize * ksize * C)
    return a, Ho, Wo


def _wmat(w_oihw):
    # PyTorch weight (Cout, Cin, kh, kw) -> (kh*kw*Cin, Cout), matching im2col order.
    Cout, Cin, kh, kw = w_oihw.shape
    return jnp.transpose(w_oihw, (2, 3, 1, 0)).reshape(kh * kw * Cin, Cout)


def conv_bn_relu_nhwc(h, w_oihw, stride, padding, scale, shift):
    """relu(bn2(conv1(h)))  (conv = cross-correlation, no bias; BN eval)."""
    Cout, _, ksize, _ = w_oihw.shape
    a, Ho, Wo = _im2col(h, ksize, stride, padding)
    out = pallas_matmul_bn_relu(a, _wmat(w_oihw).astype(jnp.bfloat16), scale, shift)
    return out.reshape(h.shape[0], Ho, Wo, Cout)


def conv_add_nhwc(x, w_oihw, res_nhwc):
    """conv2(x) + res  (identity residual seeded into the MXU accumulator)."""
    Cout, _, ksize, _ = w_oihw.shape
    a, Ho, Wo = _im2col(x, ksize, 1, 1)
    out = pallas_matmul_add(a, _wmat(w_oihw).astype(jnp.bfloat16),
                            res_nhwc.reshape(-1, Cout))
    return out.reshape(x.shape[0], Ho, Wo, Cout)


def conv_plus_shortcut_nhwc(x, w_oihw, h, wsc_oihw, stride_sc):
    """conv2(x) + shortcut_1x1(h, stride) in ONE pallas_call: both dots share
    the same VMEM accumulator (no HBM concat of activations or weights)."""
    Cout, _, ksize, _ = w_oihw.shape
    a, Ho, Wo = _im2col(x, ksize, 1, 1)                 # conv2: 3x3, stride 1, pad 1
    hs = h[:, ::stride_sc, ::stride_sc, :]              # 1x1 shortcut, stride s, pad 0
    out = pallas_matmul_shortcut(a, _wmat(w_oihw).astype(jnp.bfloat16),
                                 hs.reshape(-1, hs.shape[-1]),
                                 _wmat(wsc_oihw).astype(jnp.bfloat16))
    return out.reshape(x.shape[0], Ho, Wo, Cout)


def _bn_affine(bn_params):
    gamma, beta, mean, var = bn_params
    scale = gamma / jnp.sqrt(var + _BN_EPS)
    shift = beta - mean * scale
    return scale, shift


# --------------------------------------------------------------------------
# BasicBlock / NetworkBlock forward
# --------------------------------------------------------------------------
def basic_block(x, p, stride):
    """WideResNet BasicBlock (eval):
         h   = relu(bn1(x))
         out = relu(bn2(conv1(h, stride)))
         y   = conv2(out) + (x if equalInOut else shortcut_1x1(h, stride))"""
    in_planes = x.shape[-1]
    out_planes = p['conv1'].shape[0]
    equal_in_out = (in_planes == out_planes) and (stride == 1)
    scale1, shift1 = _bn_affine(p['bn1'])
    scale2, shift2 = _bn_affine(p['bn2'])

    # bn1+ReLU in fp32, emitted bf16; XLA fuses this into the im2col gather so
    # `h` never round-trips HBM on its own.
    h = jnp.maximum(x.astype(jnp.float32) * scale1 + shift1, 0.0).astype(jnp.bfloat16)

    out = conv_bn_relu_nhwc(h, p['conv1'], stride, 1, scale2, shift2)
    # TODO(synk): F.dropout(p=droprate_init, training=...) omitted — inference
    # semantics / droprate_init defaults to 0.0 (identity).
    if equal_in_out:
        return conv_add_nhwc(out, p['conv2'], x.astype(jnp.bfloat16))      # conv2 + x
    return conv_plus_shortcut_nhwc(out, p['conv2'], h, p['shortcut'], stride)


def network_block_forward(x_nchw, params, stride):
    x = jnp.transpose(x_nchw, (0, 2, 3, 1))                       # NCHW -> NHWC
    for i, layer in enumerate(params['layers']):
        x = basic_block(x, layer, stride if i == 0 else 1)
    return jnp.transpose(x, (0, 3, 1, 2)).astype(jnp.float32)     # NHWC -> NCHW, fp32


# --------------------------------------------------------------------------
# Deterministic parameter initialization (shapes from module __init__)
# --------------------------------------------------------------------------
def _init_bn(c):
    # BN weight=1, bias=0; PyTorch default running stats 0 / 1.
    return (jnp.ones((c,), jnp.float32), jnp.zeros((c,), jnp.float32),
            jnp.zeros((c,), jnp.float32), jnp.ones((c,), jnp.float32))


def _init_conv(key, cout, cin, k):
    fan_in = cin * k * k
    std = (2.0 / fan_in) ** 0.5
    return jax.random.normal(key, (cout, cin, k, k), jnp.float32) * std


def init_network_block_params(key, nb_layers, in_planes, out_planes, stride):
    layers = []
    for i in range(nb_layers):
        cin = in_planes if i == 0 else out_planes
        s = stride if i == 0 else 1
        key, k1, k2, k3 = jax.random.split(key, 4)
        layer = {
            'bn1': _init_bn(cin),
            'conv1': _init_conv(k1, out_planes, cin, 3),          # group_relaxed_L1L2Conv2d
            'bn2': _init_bn(out_planes),
            'conv2': _init_conv(k2, out_planes, out_planes, 3),   # MAPConv2d
        }
        if not (cin == out_planes and s == 1):
            layer['shortcut'] = _init_conv(k3, out_planes, cin, 1)  # 1x1 MAPConv2d
        layers.append(layer)
    return {'layers': layers}


if __name__ == "__main__":
    key = jax.random.PRNGKey(0)
    k_params, k_x = jax.random.split(key)
    # NetworkBlock(nb_layers=2, in_planes=16, out_planes=32, block=BasicBlock, stride=2)
    nb_layers, in_planes, out_planes, stride = 2, 16, 32, 2
    params = init_network_block_params(k_params, nb_layers, in_planes,
                                       out_planes, stride)
    x = jax.random.normal(k_x, (2, in_planes, 16, 16), jnp.float32)  # NCHW like PyTorch

    fwd = jax.jit(functools.partial(network_block_forward,
                                    params=params, stride=stride))
    y = fwd(x)
    jax.block_until_ready(y)
    assert y.shape == (2, out_planes, 8, 8)
    print("KERNEL_OK")
</pallas_src>

<mosaic_0001>
module attributes {stable_mosaic.version = 11 : i64} {
  func.func @_mm_bn_relu_kernel(%arg0: i32, %arg1: i32, %arg2: i32, %arg3: memref<64x144xbf16, #tpu.memory_space<vmem>>, %arg4: memref<144x32xbf16, #tpu.memory_space<vmem>>, %arg5: memref<1x32xf32, #tpu.memory_space<vmem>>, %arg6: memref<1x32xf32, #tpu.memory_space<vmem>>, %arg7: memref<64x32xbf16, #tpu.memory_space<vmem>>, %arg8: memref<64x32xf32, #tpu.memory_space<vmem>>) attributes {dimension_semantics = [#tpu.dimension_semantics<parallel>, #tpu.dimension_semantics<parallel>, #tpu.dimension_semantics<arbitrary>], iteration_bounds = array<i64: 2, 1, 1>, scalar_prefetch = 0 : i64, scratch_operands = 1 : i64, tpu.core_type = #tpu.core_type<tc>, window_params = [{transform_indices = @transform_0, window_bounds = array<i64: 64, 144>}, {transform_indices = @transform_1, window_bounds = array<i64: 144, 32>}, {transform_indices = @transform_2, window_bounds = array<i64: 1, 32>}, {transform_indices = @transform_3, window_bounds = array<i64: 1, 32>}, {transform_indices = @transform_4, window_bounds = array<i64: 64, 32>}]} {
    %c0_i32 = arith.constant 0 : i32
    %0 = arith.cmpi eq, %arg2, %c0_i32 : i32
    %1 = arith.extui %0 : i1 to i32
    %c0_i32_0 = arith.constant 0 : i32
    %2 = arith.cmpi ne, %1, %c0_i32_0 : i32
    scf.if %2 {
      %cst_10 = arith.constant 0.000000e+00 : f32
      %12 = vector.broadcast %cst_10 : f32 to vector<64x32xf32>
      %c0_11 = arith.constant 0 : index
      %c0_12 = arith.constant 0 : index
      %13 = vector.load %arg8[%c0_11, %c0_12] : memref<64x32xf32, #tpu.memory_space<vmem>>, vector<64x32xf32>
      tpu.vector_store %arg8[%c0_11, %c0_12], %12 {strides = array<i32>} : memref<64x32xf32, #tpu.memory_space<vmem>>, vector<64x32xf32>,
    } else {
    }
    %c0 = arith.constant 0 : index
    %c0_1 = arith.constant 0 : index
    %3 = vector.load %arg8[%c0, %c0_1] : memref<64x32xf32, #tpu.memory_space<vmem>>, vector<64x32xf32>
    %c0_2 = arith.constant 0 : index
    %c0_3 = arith.constant 0 : index
    %4 = vector.load %arg3[%c0_2, %c0_3] : memref<64x144xbf16, #tpu.memory_space<vmem>>, vector<64x144xbf16>
    %c0_4 = arith.constant 0 : index
    %c0_5 = arith.constant 0 : index
    %5 = vector.load %arg4[%c0_4, %c0_5] : memref<144x32xbf16, #tpu.memory_space<vmem>>, vector<144x32xbf16>
    %cst = arith.constant dense<0.000000e+00> : vector<64x32xf32>
    %6 = tpu.matmul %4, %5, %cst {dimension_numbers = #tpu.dot_dimension_numbers<[1], [0], [0], [1], [0, 0, 1, 1], [], []>} : vector<64x144xbf16>, vector<144x32xbf16>, vector<64x32xf32> -> vector<64x32xf32>
    %7 = arith.addf %3, %6 : vector<64x32xf32>
    %c0_6 = arith.constant 0 : index
    %c0_7 = arith.constant 0 : index
    %8 = vector.load %arg8[%c0_6, %c0_7] : memref<64x32xf32, #tpu.memory_space<vmem>>, vector<64x32xf32>
    tpu.vector_store %arg8[%c0_6, %c0_7], %7 {strides = array<i32>} : memref<64x32xf32, #tpu.memory_space<vmem>>, vector<64x32xf32>,
    %c0_i32_8 = arith.constant 0 : i32
    %9 = arith.cmpi eq, %arg2, %c0_i32_8 : i32
    %10 = arith.extui %9 : i1 to i32
    %c0_i32_9 = arith.constant 0 : i32
    %11 = arith.cmpi ne, %10, %c0_i32_9 : i32
    scf.if %11 {
      %c0_10 = arith.constant 0 : index
      %c0_11 = arith.constant 0 : index
      %12 = vector.load %arg8[%c0_10, %c0_11] : memref<64x32xf32, #tpu.memory_space<vmem>>, vector<64x32xf32>
      %c0_12 = arith.constant 0 : index
      %c0_13 = arith.constant 0 : index
      %13 = vector.load %arg5[%c0_12, %c0_13] : memref<1x32xf32, #tpu.memory_space<vmem>>, vector<1x32xf32>
      %14 = vector.broadcast %13 : vector<1x32xf32> to vector<64x32xf32>
      %15 = arith.mulf %12, %14 : vector<64x32xf32>
      %c0_14 = arith.constant 0 : index
      %c0_15 = arith.constant 0 : index
      %16 = vector.load %arg6[%c0_14, %c0_15] : memref<1x32xf32, #tpu.memory_space<vmem>>, vector<1x32xf32>
      %17 = vector.broadcast %16 : vector<1x32xf32> to vector<64x32xf32>
      %18 = arith.addf %15, %17 : vector<64x32xf32>
      %cst_16 = arith.constant 0.000000e+00 : f32
      %19 = vector.broadcast %cst_16 : f32 to vector<64x32xf32>
      %20 = arith.maximumf %18, %19 : vector<64x32xf32>
      %21 = arith.truncf %20 : vector<64x32xf32> to vector<64x32xbf16>
      %c0_17 = arith.constant 0 : index
      %c0_18 = arith.constant 0 : index
      %22 = vector.load %arg7[%c0_17, %c0_18] : memref<64x32xbf16, #tpu.memory_space<vmem>>, vector<64x32xbf16>
      tpu.vector_store %arg7[%c0_17, %c0_18], %21 {strides = array<i32>} : memref<64x32xbf16, #tpu.memory_space<vmem>>, vector<64x32xbf16>,
    } else {
    }
    return
  }
  func.func @transform_0(%arg0: i32, %arg1: i32, %arg2: i32) -> (i32, i32) {
    %c0_i32 = arith.constant 0 : i32
    return %arg0, %arg2 : i32, i32
  }
  func.func @transform_1(%arg0: i32, %arg1: i32, %arg2: i32) -> (i32, i32) {
    %c0_i32 = arith.constant 0 : i32
    return %arg2, %arg1 : i32, i32
  }
  func.func @transform_2(%arg0: i32, %arg1: i32, %arg2: i32) -> (i32, i32) {
    %c0_i32 = arith.constant 0 : i32
    %c0_i32_0 = arith.constant 0 : i32
    return %c0_i32, %arg1 : i32, i32
  }
  func.func @transform_3(%arg0: i32, %arg1: i32, %arg2: i32) -> (i32, i32) {
    %c0_i32 = arith.constant 0 : i32
    %c0_i32_0 = arith.constant 0 : i32
    return %c0_i32, %arg1 : i32, i32
  }
  func.func @transform_4(%arg0: i32, %arg1: i32, %arg2: i32) -> (i32, i32) {
    %c0_i32 = arith.constant 0 : i32
    return %arg0, %arg1 : i32, i32
  }
}

module attributes {stable_mosaic.version = 11 : i64} {
  func.func @_mm_shortcut_kernel(%arg0: i32, %arg1: i32, %arg2: i32, %arg3: memref<64x288xbf16, #tpu.memory_space<vmem>>, %arg4: memref<288x32xbf16, #tpu.memory_space<vmem>>, %arg5: memref<64x16xbf16, #tpu.memory_space<vmem>>, %arg6: memref<16x32xbf16, #tpu.memory_space<vmem>>, %arg7: memref<64x32xbf16, #tpu.memory_space<vmem>>, %arg8: memref<64x32xf32, #tpu.memory_space<vmem>>) attributes {dimension_semantics = [#tpu.dimension_semantics<parallel>, #tpu.dimension_semantics<parallel>, #tpu.dimension_semantics<arbitrary>], iteration_bounds = array<i64: 2, 1, 1>, scalar_prefetch = 0 : i64, scratch_operands = 1 : i64, tpu.core_type = #tpu.core_type<tc>, window_params = [{transform_indices = @transform_0, window_bounds = array<i64: 64, 288>}, {transform_indices = @transform_1, window_bounds = array<i64: 288, 32>}, {transform_indices = @transform_2, window_bounds = array<i64: 64, 16>}, {transform_indices = @transform_3, window_bounds = array<i64: 16, 32>}, {transform_indices = @transform_4, window_bounds = array<i64: 64, 32>}]} {
    %c0_i32 = arith.constant 0 : i32
    %0 = arith.cmpi eq, %arg2, %c0_i32 : i32
    %1 = arith.extui %0 : i1 to i32
    %c0_i32_0 = arith.constant 0 : i32
    %2 = arith.cmpi ne, %1, %c0_i32_0 : i32
    scf.if %2 {
      %c0_10 = arith.constant 0 : index
      %c0_11 = arith.constant 0 : index
      %12 = vector.load %arg5[%c0_10, %c0_11] : memref<64x16xbf16, #tpu.memory_space<vmem>>, vector<64x16xbf16>
      %c0_12 = arith.constant 0 : index
      %c0_13 = arith.constant 0 : index
      %13 = vector.load %arg6[%c0_12, %c0_13] : memref<16x32xbf16, #tpu.memory_space<vmem>>, vector<16x32xbf16>
      %cst_14 = arith.constant dense<0.000000e+00> : vector<64x32xf32>
      %14 = tpu.matmul %12, %13, %cst_14 {dimension_numbers = #tpu.dot_dimension_numbers<[1], [0], [0], [1], [0, 0, 1, 1], [], []>} : vector<64x16xbf16>, vector<16x32xbf16>, vector<64x32xf32> -> vector<64x32xf32>
      %c0_15 = arith.constant 0 : index
      %c0_16 = arith.constant 0 : index
      %15 = vector.load %arg8[%c0_15, %c0_16] : memref<64x32xf32, #tpu.memory_space<vmem>>, vector<64x32xf32>
      tpu.vector_store %arg8[%c0_15, %c0_16], %14 {strides = array<i32>} : memref<64x32xf32, #tpu.memory_space<vmem>>, vector<64x32xf32>,
    } else {
    }
    %c0 = arith.constant 0 : index
    %c0_1 = arith.constant 0 : index
    %3 = vector.load %arg8[%c0, %c0_1] : memref<64x32xf32, #tpu.memory_space<vmem>>, vector<64x32xf32>
    %c0_2 = arith.constant 0 : index
    %c0_3 = arith.constant 0 : index
    %4 = vector.load %arg3[%c0_2, %c0_3] : memref<64x288xbf16, #tpu.memory_space<vmem>>, vector<64x288xbf16>
    %c0_4 = arith.constant 0 : index
    %c0_5 = arith.constant 0 : index
    %5 = vector.load %arg4[%c0_4, %c0_5] : memref<288x32xbf16, #tpu.memory_space<vmem>>, vector<288x32xbf16>
    %cst = arith.constant dense<0.000000e+00> : vector<64x32xf32>
    %6 = tpu.matmul %4, %5, %cst {dimension_numbers = #tpu.dot_dimension_numbers<[1], [0], [0], [1], [0, 0, 1, 1], [], []>} : vector<64x288xbf16>, vector<288x32xbf16>, vector<64x32xf32> -> vector<64x32xf32>
    %7 = arith.addf %3, %6 : vector<64x32xf32>
    %c0_6 = arith.constant 0 : index
    %c0_7 = arith.constant 0 : index
    %8 = vector.load %arg8[%c0_6, %c0_7] : memref<64x32xf32, #tpu.memory_space<vmem>>, vector<64x32xf32>
    tpu.vector_store %arg8[%c0_6, %c0_7], %7 {strides = array<i32>} : memref<64x32xf32, #tpu.memory_space<vmem>>, vector<64x32xf32>,
    %c0_i32_8 = arith.constant 0 : i32
    %9 = arith.cmpi eq, %arg2, %c0_i32_8 : i32
    %10 = arith.extui %9 : i1 to i32
    %c0_i32_9 = arith.constant 0 : i32
    %11 = arith.cmpi ne, %10, %c0_i32_9 : i32
    scf.if %11 {
      %c0_10 = arith.constant 0 : index
      %c0_11 = arith.constant 0 : index
      %12 = vector.load %arg8[%c0_10, %c0_11] : memref<64x32xf32, #tpu.memory_space<vmem>>, vector<64x32xf32>
      %13 = arith.truncf %12 : vector<64x32xf32> to vector<64x32xbf16>
      %c0_12 = arith.constant 0 : index
      %c0_13 = arith.constant 0 : index
      %14 = vector.load %arg7[%c0_12, %c0_13] : memref<64x32xbf16, #tpu.memory_space<vmem>>, vector<64x32xbf16>
      tpu.vector_store %arg7[%c0_12, %c0_13], %13 {strides = array<i32>} : memref<64x32xbf16, #tpu.memory_space<vmem>>, vector<64x32xbf16>,
    } else {
    }
    return
  }
  func.func @transform_0(%arg0: i32, %arg1: i32, %arg2: i32) -> (i32, i32) {
    %c0_i32 = arith.constant 0 : i32
    return %arg0, %arg2 : i32, i32
  }
  func.func @transform_1(%arg0: i32, %arg1: i32, %arg2: i32) -> (i32, i32) {
    %c0_i32 = arith.constant 0 : i32
    return %arg2, %arg1 : i32, i32
  }
  func.func @transform_2(%arg0: i32, %arg1: i32, %arg2: i32) -> (i32, i32) {
    %c0_i32 = arith.constant 0 : i32
    %c0_i32_0 = arith.constant 0 : i32
    return %arg0, %c0_i32 : i32, i32
  }
  func.func @transform_3(%arg0: i32, %arg1: i32, %arg2: i32) -> (i32, i32) {
    %c0_i32 = arith.constant 0 : i32
    %c0_i32_0 = arith.constant 0 : i32
    return %c0_i32, %arg1 : i32, i32
  }
  func.func @transform_4(%arg0: i32, %arg1: i32, %arg2: i32) -> (i32, i32) {
    %c0_i32 = arith.constant 0 : i32
    return %arg0, %arg1 : i32, i32
  }
}

module attributes {stable_mosaic.version = 11 : i64} {
  func.func @_mm_add_kernel(%arg0: i32, %arg1: i32, %arg2: i32, %arg3: memref<64x288xbf16, #tpu.memory_space<vmem>>, %arg4: memref<288x32xbf16, #tpu.memory_space<vmem>>, %arg5: memref<64x32xbf16, #tpu.memory_space<vmem>>, %arg6: memref<64x32xbf16, #tpu.memory_space<vmem>>, %arg7: memref<64x32xf32, #tpu.memory_space<vmem>>) attributes {dimension_semantics = [#tpu.dimension_semantics<parallel>, #tpu.dimension_semantics<parallel>, #tpu.dimension_semantics<arbitrary>], iteration_bounds = array<i64: 2, 1, 1>, scalar_prefetch = 0 : i64, scratch_operands = 1 : i64, tpu.core_type = #tpu.core_type<tc>, window_params = [{transform_indices = @transform_0, window_bounds = array<i64: 64, 288>}, {transform_indices = @transform_1, window_bounds = array<i64: 288, 32>}, {transform_indices = @transform_2, window_bounds = array<i64: 64, 32>}, {transform_indices = @transform_3, window_bounds = array<i64: 64, 32>}]} {
    %c0_i32 = arith.constant 0 : i32
    %0 = arith.cmpi eq, %arg2, %c0_i32 : i32
    %1 = arith.extui %0 : i1 to i32
    %c0_i32_0 = arith.constant 0 : i32
    %2 = arith.cmpi ne, %1, %c0_i32_0 : i32
    scf.if %2 {
      %c0_10 = arith.constant 0 : index
      %c0_11 = arith.constant 0 : index
      %12 = vector.load %arg5[%c0_10, %c0_11] : memref<64x32xbf16, #tpu.memory_space<vmem>>, vector<64x32xbf16>
      %13 = arith.extf %12 : vector<64x32xbf16> to vector<64x32xf32>
      %c0_12 = arith.constant 0 : index
      %c0_13 = arith.constant 0 : index
      %14 = vector.load %arg7[%c0_12, %c0_13] : memref<64x32xf32, #tpu.memory_space<vmem>>, vector<64x32xf32>
      tpu.vector_store %arg7[%c0_12, %c0_13], %13 {strides = array<i32>} : memref<64x32xf32, #tpu.memory_space<vmem>>, vector<64x32xf32>,
    } else {
    }
    %c0 = arith.constant 0 : index
    %c0_1 = arith.constant 0 : index
    %3 = vector.load %arg7[%c0, %c0_1] : memref<64x32xf32, #tpu.memory_space<vmem>>, vector<64x32xf32>
    %c0_2 = arith.constant 0 : index
    %c0_3 = arith.constant 0 : index
    %4 = vector.load %arg3[%c0_2, %c0_3] : memref<64x288xbf16, #tpu.memory_space<vmem>>, vector<64x288xbf16>
    %c0_4 = arith.constant 0 : index
    %c0_5 = arith.constant 0 : index
    %5 = vector.load %arg4[%c0_4, %c0_5] : memref<288x32xbf16, #tpu.memory_space<vmem>>, vector<288x32xbf16>
    %cst = arith.constant dense<0.000000e+00> : vector<64x32xf32>
    %6 = tpu.matmul %4, %5, %cst {dimension_numbers = #tpu.dot_dimension_numbers<[1], [0], [0], [1], [0, 0, 1, 1], [], []>} : vector<64x288xbf16>, vector<288x32xbf16>, vector<64x32xf32> -> vector<64x32xf32>
    %7 = arith.addf %3, %6 : vector<64x32xf32>
    %c0_6 = arith.constant 0 : index
    %c0_7 = arith.constant 0 : index
    %8 = vector.load %arg7[%c0_6, %c0_7] : memref<64x32xf32, #tpu.memory_space<vmem>>, vector<64x32xf32>
    tpu.vector_store %arg7[%c0_6, %c0_7], %7 {strides = array<i32>} : memref<64x32xf32, #tpu.memory_space<vmem>>, vector<64x32xf32>,
    %c0_i32_8 = arith.constant 0 : i32
    %9 = arith.cmpi eq, %arg2, %c0_i32_8 : i32
    %10 = arith.extui %9 : i1 to i32
    %c0_i32_9 = arith.constant 0 : i32
    %11 = arith.cmpi ne, %10, %c0_i32_9 : i32
    scf.if %11 {
      %c0_10 = arith.constant 0 : index
      %c0_11 = arith.constant 0 : index
      %12 = vector.load %arg7[%c0_10, %c0_11] : memref<64x32xf32, #tpu.memory_space<vmem>>, vector<64x32xf32>
      %13 = arith.truncf %12 : vector<64x32xf32> to vector<64x32xbf16>
      %c0_12 = arith.constant 0 : index
      %c0_13 = arith.constant 0 : index
      %14 = vector.load %arg6[%c0_12, %c0_13] : memref<64x32xbf16, #tpu.memory_space<vmem>>, vector<64x32xbf16>
      tpu.vector_store %arg6[%c0_12, %c0_13], %13 {strides = array<i32>} : memref<64x32xbf16, #tpu.memory_space<vmem>>, vector<64x32xbf16>,
    } else {
    }
    return
  }
  func.func @transform_0(%arg0: i32, %arg1: i32, %arg2: i32) -> (i32, i32) {
    %c0_i32 = arith.constant 0 : i32
    return %arg0, %arg2 : i32, i32
  }
  func.func @transform_1(%arg0: i32, %arg1: i32, %arg2: i32) -> (i32, i32) {
    %c0_i32 = arith.constant 0 : i32
    return %arg2, %arg1 : i32, i32
  }
  func.func @transform_2(%arg0: i32, %arg1: i32, %arg2: i32) -> (i32, i32) {
    %c0_i32 = arith.constant 0 : i32
    return %arg0, %arg1 : i32, i32
  }
  func.func @transform_3(%arg0: i32, %arg1: i32, %arg2: i32) -> (i32, i32) {
    %c0_i32 = arith.constant 0 : i32
    return %arg0, %arg1 : i32, i32
  }
}

module attributes {stable_mosaic.version = 11 : i64} {
  func.func @_mm_bn_relu_kernel(%arg0: i32, %arg1: i32, %arg2: i32, %arg3: memref<64x288xbf16, #tpu.memory_space<vmem>>, %arg4: memref<288x32xbf16, #tpu.memory_space<vmem>>, %arg5: memref<1x32xf32, #tpu.memory_space<vmem>>, %arg6: memref<1x32xf32, #tpu.memory_space<vmem>>, %arg7: memref<64x32xbf16, #tpu.memory_space<vmem>>, %arg8: memref<64x32xf32, #tpu.memory_space<vmem>>) attributes {dimension_semantics = [#tpu.dimension_semantics<parallel>, #tpu.dimension_semantics<parallel>, #tpu.dimension_semantics<arbitrary>], iteration_bounds = array<i64: 2, 1, 1>, scalar_prefetch = 0 : i64, scratch_operands = 1 : i64, tpu.core_type = #tpu.core_type<tc>, window_params = [{transform_indices = @transform_0, window_bounds = array<i64: 64, 288>}, {transform_indices = @transform_1, window_bounds = array<i64: 288, 32>}, {transform_indices = @transform_2, window_bounds = array<i64: 1, 32>}, {transform_indices = @transform_3, window_bounds = array<i64: 1, 32>}, {transform_indices = @transform_4, window_bounds = array<i64: 64, 32>}]} {
    %c0_i32 = arith.constant 0 : i32
    %0 = arith.cmpi eq, %arg2, %c0_i32 : i32
    %1 = arith.extui %0 : i1 to i32
    %c0_i32_0 = arith.constant 0 : i32
    %2 = arith.cmpi ne, %1, %c0_i32_0 : i32
    scf.if %2 {
      %cst_10 = arith.constant 0.000000e+00 : f32
      %12 = vector.broadcast %cst_10 : f32 to vector<64x32xf32>
      %c0_11 = arith.constant 0 : index
      %c0_12 = arith.constant 0 : index
      %13 = vector.load %arg8[%c0_11, %c0_12] : memref<64x32xf32, #tpu.memory_space<vmem>>, vector<64x32xf32>
      tpu.vector_store %arg8[%c0_11, %c0_12], %12 {strides = array<i32>} : memref<64x32xf32, #tpu.memory_space<vmem>>, vector<64x32xf32>,
    } else {
    }
    %c0 = arith.constant 0 : index
    %c0_1 = arith.constant 0 : index
    %3 = vector.load %arg8[%c0, %c0_1] : memref<64x32xf32, #tpu.memory_space<vmem>>, vector<64x32xf32>
    %c0_2 = arith.constant 0 : index
    %c0_3 = arith.constant 0 : index
    %4 = vector.load %arg3[%c0_2, %c0_3] : memref<64x288xbf16, #tpu.memory_space<vmem>>, vector<64x288xbf16>
    %c0_4 = arith.constant 0 : index
    %c0_5 = arith.constant 0 : index
    %5 = vector.load %arg4[%c0_4, %c0_5] : memref<288x32xbf16, #tpu.memory_space<vmem>>, vector<288x32xbf16>
    %cst = arith.constant dense<0.000000e+00> : vector<64x32xf32>
    %6 = tpu.matmul %4, %5, %cst {dimension_numbers = #tpu.dot_dimension_numbers<[1], [0], [0], [1], [0, 0, 1, 1], [], []>} : vector<64x288xbf16>, vector<288x32xbf16>, vector<64x32xf32> -> vector<64x32xf32>
    %7 = arith.addf %3, %6 : vector<64x32xf32>
    %c0_6 = arith.constant 0 : index
    %c0_7 = arith.constant 0 : index
    %8 = vector.load %arg8[%c0_6, %c0_7] : memref<64x32xf32, #tpu.memory_space<vmem>>, vector<64x32xf32>
    tpu.vector_store %arg8[%c0_6, %c0_7], %7 {strides = array<i32>} : memref<64x32xf32, #tpu.memory_space<vmem>>, vector<64x32xf32>,
    %c0_i32_8 = arith.constant 0 : i32
    %9 = arith.cmpi eq, %arg2, %c0_i32_8 : i32
    %10 = arith.extui %9 : i1 to i32
    %c0_i32_9 = arith.constant 0 : i32
    %11 = arith.cmpi ne, %10, %c0_i32_9 : i32
    scf.if %11 {
      %c0_10 = arith.constant 0 : index
      %c0_11 = arith.constant 0 : index
      %12 = vector.load %arg8[%c0_10, %c0_11] : memref<64x32xf32, #tpu.memory_space<vmem>>, vector<64x32xf32>
      %c0_12 = arith.constant 0 : index
      %c0_13 = arith.constant 0 : index
      %13 = vector.load %arg5[%c0_12, %c0_13] : memref<1x32xf32, #tpu.memory_space<vmem>>, vector<1x32xf32>
      %14 = vector.broadcast %13 : vector<1x32xf32> to vector<64x32xf32>
      %15 = arith.mulf %12, %14 : vector<64x32xf32>
      %c0_14 = arith.constant 0 : index
      %c0_15 = arith.constant 0 : index
      %16 = vector.load %arg6[%c0_14, %c0_15] : memref<1x32xf32, #tpu.memory_space<vmem>>, vector<1x32xf32>
      %17 = vector.broadcast %16 : vector<1x32xf32> to vector<64x32xf32>
      %18 = arith.addf %15, %17 : vector<64x32xf32>
      %cst_16 = arith.constant 0.000000e+00 : f32
      %19 = vector.broadcast %cst_16 : f32 to vector<64x32xf32>
      %20 = arith.maximumf %18, %19 : vector<64x32xf32>
      %21 = arith.truncf %20 : vector<64x32xf32> to vector<64x32xbf16>
      %c0_17 = arith.constant 0 : index
      %c0_18 = arith.constant 0 : index
      %22 = vector.load %arg7[%c0_17, %c0_18] : memref<64x32xbf16, #tpu.memory_space<vmem>>, vector<64x32xbf16>
      tpu.vector_store %arg7[%c0_17, %c0_18], %21 {strides = array<i32>} : memref<64x32xbf16, #tpu.memory_space<vmem>>, vector<64x32xbf16>,
    } else {
    }
    return
  }
  func.func @transform_0(%arg0: i32, %arg1: i32, %arg2: i32) -> (i32, i32) {
    %c0_i32 = arith.constant 0 : i32
    return %arg0, %arg2 : i32, i32
  }
  func.func @transform_1(%arg0: i32, %arg1: i32, %arg2: i32) -> (i32, i32) {
    %c0_i32 = arith.constant 0 : i32
    return %arg2, %arg1 : i32, i32
  }
  func.func @transform_2(%arg0: i32, %arg1: i32, %arg2: i32) -> (i32, i32) {
    %c0_i32 = arith.constant 0 : i32
    %c0_i32_0 = arith.constant 0 : i32
    return %c0_i32, %arg1 : i32, i32
  }
  func.func @transform_3(%arg0: i32, %arg1: i32, %arg2: i32) -> (i32, i32) {
    %c0_i32 = arith.constant 0 : i32
    %c0_i32_0 = arith.constant 0 : i32
    return %c0_i32, %arg1 : i32, i32
  }
  func.func @transform_4(%arg0: i32, %arg1: i32, %arg2: i32) -> (i32, i32) {
    %c0_i32 = arith.constant 0 : i32
    return %arg0, %arg1 : i32, i32
  }
}

</mosaic_0001>

<bundles_post_ra>
// kernel: network_block_forward.4
= control target key start
LH: loop header
LB: loop body
LE: loop exit
PB: predicated region body
PF: predicated region fallthrough
CT: control target
= control target key end

     0   :  { %s911_s15 = smov 0   ;;  %s913_s16 = smov 0   ;;  %s1057_s0 = inlined_call_operand.vmem [shape: bf16[128,144], index: 0, kind: input, shape index: {}]   ;;  %s1058_s1 = inlined_call_operand.vmem [shape: bf16[144,32], index: 1, kind: input, shape index: {}]   ;;  %s1059_s2 = inlined_call_operand.vmem [shape: f32[1,32], index: 2, kind: input, shape index: {}]   ;;  %s1060_s3 = inlined_call_operand.vmem [shape: f32[1,32], index: 3, kind: input, shape index: {}]   ;;  %s1061_s4 = inlined_call_operand.vmem [shape: bf16[128,32], index: 4, kind: output, shape index: {}]  }
   0x1   :  { %s915_s17 = smov 0  }
   0x2 LB: > { %s33_s18 = sadd.s32 1, %s879_s16  ;;  %p727_p0 = scmp.ge.s32.totalorder %s883_s17, 1  ;;  %s883_s17 = sphi %s915_s17, %s14_s17   ;;  %s879_s16 = sphi %s913_s16, %s1063_s16   ;;  %s875_s15 = sphi %s911_s15, %s1062_s15  }
   0x3   : > { %p35_p1 = scmp.ge.s32.totalorder %s33_s18, 2  ;;  %p224_p2 = scmp.lt.s32.totalorder %s883_s17, 3 }
   0x5   : > { %s1065_s18 = smov (%p35_p1, %s33_s18), 0  ;;  %p225_p3 = pnand %p727_p0, %p224_p2 }
   0x6   : > { %s728_s23 = sshll.u32 (!%p225_p3), %s875_s15, 3 }
   0x7   : > { %228 = sbr.rel (%p225_p3) target bundleno = 222 (0xde), region = 36  ;;  %p274_p4 = scmp.lt.s32.totalorder (!%p225_p3), %s728_s23, 15 }
   0xc   : > { %v823_v0 = vld [vmem:[%s1058_s1 + $0x38] sm:$0xff]  ;;  %v824_v1 = vld [vmem:[%s1058_s1 + $0x40] sm:$0xff]  ;;  %v822_v2 = vld [vmem:[%s1058_s1 + $0x30] sm:$0xff]  ;;  %s1067_s23 = smov (!%p274_p4, %s728_s23), 15  ;;  %vm446_vm0 = vcmask 130048   ;;  %vm313_vm1 = vcmask 261120  }
   0xd   : > { %459 = vmatpush.bf16.msra.mxu0 %v823_v0  ;;  %825 = vmatpush.bf16.msra.mxu2 %v823_v0  ;;  %s807_s26 = sshll.u32 %s1067_s23, 3  ;;  %v821_v3 = vld [vmem:[%s1058_s1 + $0x28] sm:$0xff]  ;;  %v820_v8 = vld [vmem:[%s1058_s1 + $0x20] sm:$0xff]  ;;  %v819_v11 = vld [vmem:[%s1058_s1 + $0x18] sm:$0xff]  ;;  %v885_v33 = vmov 0.0   ;;  %s732_s24 = sshll.u32 %s1067_s23, 2 }
   0xe   : > { %833 = vmatpush.bf16.msra.mxu3 %v824_v1  ;;  %495 = vmatpush.bf16.msra.mxu1 %v824_v1  ;;  %s944_s29 = scalar_lea.vmem %s1057_s0, %s807_s26  ;;  %v818_v12 = vld [vmem:[%s1058_s1 + $0x10] sm:$0xff]  ;;  %v817_v16 = vld [vmem:[%s1058_s1 + $0x8] sm:$0xff]  ;;  %v816_v17 = vld [vmem:[%s1058_s1] sm:$0xff]  ;;  %314 = vst.msk [vmem:[#allocation2] sm:$0xff] %vm313_vm1, %v885_v33  ;;  %s1011_s27 = scalar_lea.vmem %s1061_s4, %s732_s24  ;;  %vm585_vm2 = vcmask 257024  }
   0xf   : > { %v810_v4 = vld [vmem:[%s944_s29 + $0x14] sm:$0xf]  ;;  %v745_v5 = vld [vmem:[%s944_s29 + $0x18] sm:$0xf0]  ;;  %v808_v7 = vld [vmem:[%s944_s29 + $0x4] sm:$0xf] }
  0x10   : > { %v748_v6 = vor.u32 %v810_v4, %v745_v5  ;;  %v737_v9 = vld [vmem:[%s944_s29 + $0x8] sm:$0xf0]  ;;  %v812_v13 = vld [vmem:[%s944_s29 + $0x24] sm:$0xf]  ;;  %v735_v18 = vld [vmem:[%s944_s29] sm:$0xf] }
  0x11   : > { %460 = vmatpush.bf16.msra.mxu0 %v822_v2  ;;  %826 = vmatpush.bf16.msra.mxu2 %v822_v2  ;;  %v740_v10 = vor.u32 %v808_v7, %v737_v9  ;;  %v753_v14 = vld [vmem:[%s944_s29 + $0x28] sm:$0xf0]  ;;  %v809_v19 = vld [vmem:[%s944_s29 + $0x4] sm:$0xf0]  ;;  %v751_v20 = vld [vmem:[%s944_s29 + $0x20] sm:$0xf] }
  0x12   : > { %802 = vmatmul.msk.bf16.vlgmr.msra.gmra.mxu3 %vm446_vm0, %v748_v6  ;;  %v756_v15 = vor.u32 %v812_v13, %v753_v14  ;;  %v813_v21 = vld [vmem:[%s944_s29 + $0x24] sm:$0xf0]  ;;  %v736_v22 = vor.u32 %v809_v19, %v735_v18  ;;  %v814_v24 = vld [vmem:[%s944_s29 + $0x34] sm:$0xf]  ;;  %v761_v25 = vld [vmem:[%s944_s29 + $0x38] sm:$0xf0] }
  0x13   : > { %801 = vmatmul.msk.bf16.vlgmr.msra.gmra.mxu1 %vm446_vm0, %v740_v10  ;;  %v752_v23 = vor.u32 %v813_v21, %v751_v20  ;;  %v764_v26 = vor.u32 %v814_v24, %v761_v25  ;;  %v743_v27 = vld [vmem:[%s944_s29 + $0x10] sm:$0xf]  ;;  %v811_v28 = vld [vmem:[%s944_s29 + $0x14] sm:$0xf0]  ;;  %315 = vst.msk [vmem:[#allocation2 + $0x8] sm:$0xff] %vm313_vm1, %v885_v33 }
  0x14   : > { %v759_v29 = vld [vmem:[%s944_s29 + $0x30] sm:$0xf]  ;;  %v815_v30 = vld [vmem:[%s944_s29 + $0x34] sm:$0xf0]  ;;  %v744_v31 = vor.u32 %v811_v28, %v743_v27  ;;  %316 = vst.msk [vmem:[#allocation2 + $0x10] sm:$0xff] %vm313_vm1, %v885_v33 }
  0x15   : > { %461 = vmatpush.bf16.msra.mxu0 %v821_v3  ;;  %827 = vmatpush.bf16.msra.mxu2 %v821_v3  ;;  %v760_v32 = vor.u32 %v815_v30, %v759_v29  ;;  %317 = vst.msk [vmem:[#allocation2 + $0x18] sm:$0xff] %vm313_vm1, %v885_v33  ;;  %v322_v38 = vld [vmem:[#allocation2] sm:$0xff] }
  0x16   : > { %318 = vst.msk [vmem:[#allocation2 + $0x20] sm:$0xff] %vm313_vm1, %v885_v33  ;;  %v996_v48 = vld [vmem:[%s1059_s2] ss:$0 sm:$0xff] }
  0x17   : > { %319 = vst.msk [vmem:[#allocation2 + $0x28] sm:$0xff] %vm313_vm1, %v885_v33  ;;  %v1001_v51 = vld [vmem:[%s1060_s3] ss:$0 sm:$0xff] }
  0x18   : > { %320 = vst.msk [vmem:[#allocation2 + $0x30] sm:$0xff] %vm313_vm1, %v885_v33 }
  0x19   : > { %462 = vmatpush.bf16.msra.mxu0 %v820_v8  ;;  %828 = vmatpush.bf16.msra.mxu2 %v820_v8  ;;  %321 = vst.msk [vmem:[#allocation2 + $0x38] sm:$0xff] %vm313_vm1, %v885_v33 }
  0x1a   : > { %v323_v47 = vld [vmem:[#allocation2 + $0x8] sm:$0xff] }
  0x1b   : > { %v324_v60 = vld [vmem:[#allocation2 + $0x10] sm:$0xff] }
  0x1c   : > { %v325_v14 = vld [vmem:[#allocation2 + $0x18] sm:$0xff] }
  0x1d   : > { %463 = vmatpush.bf16.msra.mxu0 %v819_v11  ;;  %829 = vmatpush.bf16.msra.mxu2 %v819_v11  ;;  %v326_v43 = vld [vmem:[#allocation2 + $0x20] sm:$0xff] }
  0x1e   : > { %v327_v57 = vld [vmem:[#allocation2 + $0x28] sm:$0xff] }
  0x1f   : > { %v328_v10 = vld [vmem:[#allocation2 + $0x30] sm:$0xff] }
  0x20   : > { %v329_v28 = vld [vmem:[#allocation2 + $0x38] sm:$0xff] }
  0x21   : > { %464 = vmatpush.bf16.msra.mxu0 %v818_v12  ;;  %830 = vmatpush.bf16.msra.mxu2 %v818_v12 }
  0x22   : > { %803 = vmatmul.msk.bf16.gmra.mxu3 %vm446_vm0, %v756_v15 }
  0x25   : > { %465 = vmatpush.bf16.msra.mxu0 %v817_v16  ;;  %831 = vmatpush.bf16.msra.mxu2 %v817_v16 }
  0x29   : > { %466 = vmatpush.bf16.msra.mxu0 %v816_v17  ;;  %832 = vmatpush.bf16.msra.mxu2 %v816_v17 }
  0x2c   : > { %467 = vmatmul.bf16.vlgmr.msra.gmra.mxu0 %v736_v22  ;;  %477 = vmatmul.bf16.vlgmr.msra.gmra.mxu2 %v752_v23 }
  0x32   : > { %804 = vmatmul.msk.bf16.gmra.mxu3 %vm446_vm0, %v764_v26 }
  0x3c   : > { %472 = vmatmul.bf16.gmra.mxu0 %v744_v31  ;;  %482 = vmatmul.bf16.gmra.mxu2 %v760_v32 }
  0x90   : > { %v497_v36 = vpop.f32.mrf.mxu1 }
  0x95   : > { %v502_v34 = vpop.f32.mrf.mxu3 }
  0x98   : > { %v499_v42 = vpop.f32.mrf.mxu1 }
  0x9d   : > { %v504_v35 = vpop.f32.mrf.mxu3 }
  0xa5   : > { %v507_v39 = vpop.f32.mrf.mxu3 }
  0xa9   : > { %v468_v37 = vpop.f32.mrf.mxu0 }
  0xaa   : > { %v498_v40 = vadd.f32 %v497_v36, %v468_v37 }
  0xac   : > { %v517_v41 = vadd.f32 %v498_v40, %v322_v38 }
  0xad   : > { %v509_v52 = vpop.f32.mrf.mxu3 }
  0xae   : > { %526 = vst.msk [vmem:[#allocation2] sm:$0xff] %vm313_vm1, %v517_v41 }
  0xaf   : > { %v478_v44 = vpop.f32.mrf.mxu2 }
  0xb0   : > { %v508_v45 = vadd.f32 %v507_v39, %v478_v44 }
  0xb1   : > { %v470_v46 = vpop.f32.mrf.mxu0 }
  0xb2   : > { %v500_v49 = vadd.f32 %v499_v42, %v470_v46  ;;  %v521_v50 = vadd.f32 %v508_v45, %v326_v43 }
  0xb4   : > { %v518_v53 = vadd.f32 %v500_v49, %v323_v47  ;;  %530 = vst.msk [vmem:[#allocation2 + $0x20] sm:$0xff] %vm313_vm1, %v521_v50 }
  0xb5   : > { %v537_v54 = vld [vmem:[#allocation2] sm:$0xff]  ;;  %v512_v7 = vpop.f32.mrf.mxu3 }
  0xb6   : > { %v549_v55 = vmul.f32 %v996_v48, %v537_v54  ;;  %527 = vst.msk [vmem:[#allocation2 + $0x8] sm:$0xff] %vm313_vm1, %v518_v53 }
  0xb7   : > { %v480_v58 = vpop.f32.mrf.mxu2 }
  0xb8   : > { %v561_v56 = vadd.f32 %v1001_v51, %v549_v55  ;;  %v510_v59 = vadd.f32 %v509_v52, %v480_v58 }
  0xb9   : > { %v473_v61 = vpop.f32.mrf.mxu0 }
  0xba   : > { %v569_v62 = vmax.f32 %v561_v56, 0.0  ;;  %v503_v63 = vadd.f32 %v502_v34, %v473_v61  ;;  %v522_v0 = vadd.f32 %v510_v59, %v327_v57 }
  0xbb   : > { %v541_v2 = vld [vmem:[#allocation2 + $0x20] sm:$0xff] }
  0xbc   : > { %v577_v1 = vpack.c.bf16 %v569_v62, %v569_v62  ;;  %v519_v3 = vadd.f32 %v503_v63, %v324_v60  ;;  %v553_v4 = vmul.f32 %v996_v48, %v541_v2  ;;  %531 = vst.msk [vmem:[#allocation2 + $0x28] sm:$0xff] %vm313_vm1, %v522_v0 }
  0xbd   : > { %v538_v5 = vld [vmem:[#allocation2 + $0x8] sm:$0xff]  ;;  %v514_v27 = vpop.f32.mrf.mxu3 }
  0xbe   : > { %586 = vst.msk [vmem:[%s1011_s27] sm:$0xf] %vm585_vm2, %v577_v1  ;;  %v550_v6 = vmul.f32 %v996_v48, %v538_v5  ;;  %v565_v8 = vadd.f32 %v1001_v51, %v553_v4 }
  0xbf   : > { %528 = vst.msk [vmem:[#allocation2 + $0x10] sm:$0xff] %vm313_vm1, %v519_v3  ;;  %v483_v11 = vpop.f32.mrf.mxu2 }
  0xc0   : > { %v562_v9 = vadd.f32 %v1001_v51, %v550_v6  ;;  %v573_v12 = vmax.f32 %v565_v8, 0.0  ;;  %v513_v13 = vadd.f32 %v512_v7, %v483_v11 }
  0xc1   : > { %v475_v15 = vpop.f32.mrf.mxu0 }
  0xc2   : > { %v570_v16 = vmax.f32 %v562_v9, 0.0  ;;  %v505_v17 = vadd.f32 %v504_v35, %v475_v15  ;;  %v581_v18 = vpack.c.bf16 %v573_v12, %v573_v12  ;;  %v523_v19 = vadd.f32 %v513_v13, %v328_v10 }
  0xc3   : > { %v542_v21 = vld [vmem:[#allocation2 + $0x28] sm:$0xff] }
  0xc4   : > { %v578_v20 = vpack.c.bf16 %v570_v16, %v570_v16  ;;  %v520_v22 = vadd.f32 %v505_v17, %v325_v14  ;;  %590 = vst.msk [vmem:[%s1011_s27 + $0x10] sm:$0xf] %vm585_vm2, %v581_v18  ;;  %v554_v23 = vmul.f32 %v996_v48, %v542_v21 }
  0xc5   : > { %532 = vst.msk [vmem:[#allocation2 + $0x30] sm:$0xff] %vm313_vm1, %v523_v19 }
  0xc6   : > { %587 = vst.msk [vmem:[%s1011_s27 + $0x4] sm:$0xf] %vm585_vm2, %v578_v20  ;;  %v539_v24 = vld [vmem:[#allocation2 + $0x10] sm:$0xff]  ;;  %v566_v25 = vadd.f32 %v1001_v51, %v554_v23 }
  0xc7   : > { %v551_v26 = vmul.f32 %v996_v48, %v539_v24  ;;  %529 = vst.msk [vmem:[#allocation2 + $0x18] sm:$0xff] %vm313_vm1, %v520_v22  ;;  %v485_v29 = vpop.f32.mrf.mxu2 }
  0xc8   : > { %v574_v30 = vmax.f32 %v566_v25, 0.0  ;;  %v515_v32 = vadd.f32 %v514_v27, %v485_v29 }
  0xc9   : > { %v563_v31 = vadd.f32 %v1001_v51, %v551_v26 }
  0xca   : > { %v582_v33 = vpack.c.bf16 %v574_v30, %v574_v30  ;;  %v524_v35 = vadd.f32 %v515_v32, %v329_v28 }
  0xcb   : > { %v571_v34 = vmax.f32 %v563_v31, 0.0 }
  0xcc   : > { %591 = vst.msk [vmem:[%s1011_s27 + $0x14] sm:$0xf] %vm585_vm2, %v582_v33  ;;  %v543_v37 = vld [vmem:[#allocation2 + $0x30] sm:$0xff] }
  0xcd   : > { %v579_v36 = vpack.c.bf16 %v571_v34, %v571_v34  ;;  %533 = vst.msk [vmem:[#allocation2 + $0x38] sm:$0xff] %vm313_vm1, %v524_v35  ;;  %v555_v38 = vmul.f32 %v996_v48, %v543_v37 }
  0xce   : > { %v540_v39 = vld [vmem:[#allocation2 + $0x18] sm:$0xff] }
  0xcf   : > { %588 = vst.msk [vmem:[%s1011_s27 + $0x8] sm:$0xf] %vm585_vm2, %v579_v36  ;;  %v552_v40 = vmul.f32 %v996_v48, %v540_v39  ;;  %v567_v41 = vadd.f32 %v1001_v51, %v555_v38 }
  0xd1   : > { %v564_v42 = vadd.f32 %v1001_v51, %v552_v40  ;;  %v575_v43 = vmax.f32 %v567_v41, 0.0 }
  0xd3   : > { %v572_v44 = vmax.f32 %v564_v42, 0.0  ;;  %v583_v45 = vpack.c.bf16 %v575_v43, %v575_v43 }
  0xd4   : > { %v544_v46 = vld [vmem:[#allocation2 + $0x38] sm:$0xff] }
  0xd5   : > { %v580_v47 = vpack.c.bf16 %v572_v44, %v572_v44  ;;  %v556_v49 = vmul.f32 %v996_v48, %v544_v46  ;;  %592 = vst.msk [vmem:[%s1011_s27 + $0x18] sm:$0xf] %vm585_vm2, %v583_v45 }
  0xd7   : > { %589 = vst.msk [vmem:[%s1011_s27 + $0xc] sm:$0xf] %vm585_vm2, %v580_v47  ;;  %v568_v50 = vadd.f32 %v1001_v51, %v556_v49 }
  0xd9   : > { %v576_v52 = vmax.f32 %v568_v50, 0.0 }
  0xdb   : > { %v584_v53 = vpack.c.bf16 %v576_v52, %v576_v52 }
  0xdd   : > { %593 = vst.msk [vmem:[%s1011_s27 + $0x1c] sm:$0xf] %vm585_vm2, %v584_v53 }
  0xde PF: > { %s14_s17 = sadd.s32 1, %s883_s17   ;;  %s1062_s15 = smov %s879_s16 }
  0xdf   : > { %p11_p5 = scmp.ge.s32.totalorder %s14_s17, 4   ;;  %s1063_s16 = smov %s1065_s18 }
  0xe1   :  { %13 = sbr.rel (!%p11_p5) target bundleno = 2 (0x2), region = 83 }

// kernel: network_block_forward.5
= control target key start
LH: loop header
LB: loop body
LE: loop exit
PB: predicated region body
PF: predicated region fallthrough
CT: control target
= control target key end

     0   :  { %s1184_s15 = smov 0   ;;  %s1186_s16 = smov 0   ;;  %s1359_s0 = inlined_call_operand.vmem [shape: bf16[128,288], index: 0, kind: input, shape index: {}]   ;;  %s1360_s1 = inlined_call_operand.vmem [shape: bf16[288,32], index: 1, kind: input, shape index: {}]   ;;  %s1361_s2 = inlined_call_operand.vmem [shape: bf16[128,16], index: 2, kind: input, shape index: {}]   ;;  %s1362_s3 = inlined_call_operand.vmem [shape: bf16[16,32], index: 3, kind: input, shape index: {}]   ;;  %s1363_s4 = inlined_call_operand.vmem [shape: bf16[128,32], index: 4, kind: output, shape index: {}]  }
   0x1   :  { %s1188_s17 = smov 0  }
   0x2 LB: > { %s33_s18 = sadd.s32 1, %s1153_s16  ;;  %p918_p0 = scmp.ge.s32.totalorder %s1157_s17, 1  ;;  %s1157_s17 = sphi %s1188_s17, %s14_s17   ;;  %s1153_s16 = sphi %s1186_s16, %s1365_s16   ;;  %s1149_s15 = sphi %s1184_s15, %s1364_s15  }
   0x3   : > { %p35_p1 = scmp.ge.s32.totalorder %s33_s18, 2  ;;  %p228_p2 = scmp.lt.s32.totalorder %s1157_s17, 3 }
   0x5   : > { %s1367_s18 = smov (%p35_p1, %s33_s18), 0  ;;  %p229_p3 = pnand %p918_p0, %p228_p2 }
   0x6   : > { %s919_s23 = sshll.u32 (!%p229_p3), %s1149_s15, 3 }
   0x7   : > { %232 = sbr.rel (%p229_p3) target bundleno = 250 (0xfa), region = 36  ;;  %p281_p4 = scmp.lt.s32.totalorder (!%p229_p3), %s919_s23, 15 }
   0xc   : > { %v1099_v0 = vld [vmem:[%s1360_s1 + $0x38] sm:$0xff]  ;;  %v1098_v2 = vld [vmem:[%s1360_s1 + $0x30] sm:$0xff]  ;;  %v1109_v4 = vld [vmem:[%s1360_s1 + $0x88] sm:$0xff]  ;;  %s1369_s23 = smov (!%p281_p4, %s919_s23), 15  ;;  %vm360_vm0 = vcmask 130048   ;;  %vm402_vm1 = vcmask 261120  }
   0xd   : > { %v1107_v1 = vld [vmem:[%s1360_s1 + $0x78] sm:$0xff]  ;;  %652 = vmatpush.bf16.msra.mxu1 %v1099_v0  ;;  %v1106_v3 = vld [vmem:[%s1360_s1 + $0x70] sm:$0xff]  ;;  %v1079_v5 = vld [vmem:[%s1362_s3] sm:$0xff]  ;;  %716 = vmatpush.bf16.msra.mxu3 %v1109_v4  ;;  %s1110_s8 = smul.u32 12, %s1369_s23  ;;  %s922_s9 = sshll.u32 %s1369_s23, 2  ;;  %vm774_vm2 = vcmask 257024  }
   0xe   : > { %681 = vmatpush.bf16.msra.mxu2 %v1107_v1  ;;  %v1108_v6 = vld [vmem:[%s1360_s1 + $0x80] sm:$0xff]  ;;  %v1097_v7 = vld [vmem:[%s1360_s1 + $0x28] sm:$0xff]  ;;  %s1238_s19 = scalar_lea.vmem %s1361_s2, %s922_s9  ;;  %380 = vmatpush.bf16.msra.mxu0 %v1079_v5  ;;  %v1095_v15 = vld [vmem:[%s1360_s1 + $0x18] sm:$0xff]  ;;  %s1323_s25 = scalar_lea.vmem %s1363_s4, %s922_s9 }
   0xf   : > { %v1105_v8 = vld [vmem:[%s1360_s1 + $0x68] sm:$0xff]  ;;  %s1243_s22 = scalar_lea.vmem %s1359_s0, %s1110_s8  ;;  %v1075_v9 = vld [vmem:[%s1238_s19] sm:$0xff]  ;;  %v1103_v16 = vld [vmem:[%s1360_s1 + $0x58] sm:$0xff] }
  0x10   : > { %v959_v10 = vld [vmem:[%s1243_s22 + $0x8] sm:$0xf]  ;;  %v1082_v11 = vld [vmem:[%s1243_s22 + $0x10] sm:$0xf0]  ;;  %v1096_v13 = vld [vmem:[%s1360_s1 + $0x20] sm:$0xff] }
  0x11   : > { %653 = vmatpush.bf16.msra.mxu1 %v1098_v2  ;;  %717 = vmatpush.bf16.msra.mxu3 %v1108_v6  ;;  %v960_v12 = vor.u32 %v1082_v11, %v959_v10  ;;  %v1104_v14 = vld [vmem:[%s1360_s1 + $0x60] sm:$0xff]  ;;  %v1094_v17 = vld [vmem:[%s1360_s1 + $0x10] sm:$0xff]  ;;  %v1085_v20 = vld [vmem:[%s1243_s22 + $0x28] sm:$0xf0] }
  0x12   : > { %682 = vmatpush.bf16.msra.mxu2 %v1106_v3  ;;  %945 = vmatmul.msk.bf16.vlgmr.msra.gmra.mxu0 %vm360_vm0, %v1075_v9  ;;  %v1102_v18 = vld [vmem:[%s1360_s1 + $0x50] sm:$0xff]  ;;  %v971_v19 = vld [vmem:[%s1243_s22 + $0x20] sm:$0xf]  ;;  %v1093_v21 = vld [vmem:[%s1360_s1 + $0x8] sm:$0xff] }
  0x13   : > { %v1101_v22 = vld [vmem:[%s1360_s1 + $0x48] sm:$0xff]  ;;  %v972_v24 = vor.u32 %v1085_v20, %v971_v19  ;;  %v1092_v25 = vld [vmem:[%s1360_s1] sm:$0xff]  ;;  %v953_v30 = vld [vmem:[%s1243_s22 + $0xc] sm:$0xf0] }
  0x14   : > { %1069 = vmatmul.msk.bf16.vlgmr.msra.gmra.mxu3 %vm402_vm1, %v960_v12  ;;  %v1076_v23 = vld [vmem:[%s1238_s19 + $0x8] sm:$0xff]  ;;  %v1100_v26 = vld [vmem:[%s1360_s1 + $0x40] sm:$0xff]  ;;  %v983_v33 = vld [vmem:[%s1243_s22 + $0x38] sm:$0xf] }
  0x15   : > { %654 = vmatpush.bf16.msra.mxu1 %v1097_v7  ;;  %v951_v27 = vld [vmem:[%s1243_s22] sm:$0xf]  ;;  %v1081_v28 = vld [vmem:[%s1243_s22 + $0x8] sm:$0xf0]  ;;  %v1080_v29 = vld [vmem:[%s1243_s22 + $0x4] sm:$0xf] }
  0x16   : > { %683 = vmatpush.bf16.msra.mxu2 %v1105_v8  ;;  %v952_v31 = vor.u32 %v1081_v28, %v951_v27  ;;  %v956_v32 = vor.u32 %v1080_v29, %v953_v30  ;;  %v1088_v34 = vld [vmem:[%s1243_s22 + $0x40] sm:$0xf0]  ;;  %v1077_v35 = vld [vmem:[%s1238_s19 + $0x10] sm:$0xff]  ;;  %v963_v37 = vld [vmem:[%s1243_s22 + $0x18] sm:$0xf] }
  0x17   : > { %v984_v36 = vor.u32 %v1088_v34, %v983_v33  ;;  %v1084_v38 = vld [vmem:[%s1243_s22 + $0x20] sm:$0xf0]  ;;  %v1083_v39 = vld [vmem:[%s1243_s22 + $0x1c] sm:$0xf]  ;;  %v965_v40 = vld [vmem:[%s1243_s22 + $0x24] sm:$0xf0] }
  0x18   : > { %v964_v41 = vor.u32 %v1084_v38, %v963_v37  ;;  %v968_v42 = vor.u32 %v1083_v39, %v965_v40  ;;  %v995_v43 = vld [vmem:[%s1243_s22 + $0x50] sm:$0xf]  ;;  %v1091_v44 = vld [vmem:[%s1243_s22 + $0x58] sm:$0xf0]  ;;  %v1086_v49 = vld [vmem:[%s1243_s22 + $0x34] sm:$0xf] }
  0x19   : > { %655 = vmatpush.bf16.msra.mxu1 %v1096_v13  ;;  %v1078_v45 = vld [vmem:[%s1238_s19 + $0x18] sm:$0xff]  ;;  %v996_v46 = vor.u32 %v1091_v44, %v995_v43  ;;  %v975_v47 = vld [vmem:[%s1243_s22 + $0x30] sm:$0xf]  ;;  %v977_v50 = vld [vmem:[%s1243_s22 + $0x3c] sm:$0xf0] }
  0x1a   : > { %684 = vmatpush.bf16.msra.mxu2 %v1104_v14  ;;  %v1087_v48 = vld [vmem:[%s1243_s22 + $0x38] sm:$0xf0]  ;;  %v980_v52 = vor.u32 %v1086_v49, %v977_v50  ;;  %v987_v53 = vld [vmem:[%s1243_s22 + $0x48] sm:$0xf]  ;;  %v1090_v54 = vld [vmem:[%s1243_s22 + $0x50] sm:$0xf0] }
  0x1b   : > { %v976_v51 = vor.u32 %v1087_v48, %v975_v47  ;;  %v1089_v55 = vld [vmem:[%s1243_s22 + $0x4c] sm:$0xf]  ;;  %v989_v56 = vld [vmem:[%s1243_s22 + $0x54] sm:$0xf0]  ;;  %v988_v57 = vor.u32 %v1090_v54, %v987_v53 }
  0x1c   : > { %v992_v58 = vor.u32 %v1089_v55, %v989_v56 }
  0x1d   : > { %656 = vmatpush.bf16.msra.mxu1 %v1095_v15 }
  0x1e   : > { %685 = vmatpush.bf16.msra.mxu2 %v1103_v16 }
  0x21   : > { %657 = vmatpush.bf16.msra.mxu1 %v1094_v17 }
  0x22   : > { %686 = vmatpush.bf16.msra.mxu2 %v1102_v18  ;;  %946 = vmatmul.msk.bf16.gmra.mxu0 %vm360_vm0, %v1076_v23 }
  0x24   : > { %1070 = vmatmul.msk.bf16.gmra.mxu3 %vm402_vm1, %v972_v24 }
  0x25   : > { %658 = vmatpush.bf16.msra.mxu1 %v1093_v21 }
  0x26   : > { %687 = vmatpush.bf16.msra.mxu2 %v1101_v22 }
  0x29   : > { %659 = vmatpush.bf16.msra.mxu1 %v1092_v25 }
  0x2a   : > { %688 = vmatpush.bf16.msra.mxu2 %v1100_v26 }
  0x2c   : > { %660 = vmatmul.bf16.vlgmr.msra.gmra.mxu1 %v952_v31 }
  0x2d   : > { %689 = vmatmul.bf16.vlgmr.msra.gmra.mxu2 %v956_v32 }
  0x32   : > { %947 = vmatmul.msk.bf16.gmra.mxu0 %vm360_vm0, %v1077_v35 }
  0x34   : > { %1071 = vmatmul.msk.bf16.gmra.mxu3 %vm402_vm1, %v984_v36 }
  0x3c   : > { %665 = vmatmul.bf16.gmra.mxu1 %v964_v41 }
  0x3d   : > { %694 = vmatmul.bf16.gmra.mxu2 %v968_v42 }
  0x42   : > { %948 = vmatmul.msk.bf16.gmra.mxu0 %vm360_vm0, %v1078_v45 }
  0x44   : > { %1072 = vmatmul.msk.bf16.gmra.mxu3 %vm402_vm1, %v996_v46 }
  0x4c   : > { %670 = vmatmul.bf16.gmra.mxu1 %v976_v51 }
  0x4d   : > { %699 = vmatmul.bf16.gmra.mxu2 %v980_v52 }
  0x5c   : > { %675 = vmatmul.bf16.gmra.mxu1 %v988_v57 }
  0x5d   : > { %704 = vmatmul.bf16.gmra.mxu2 %v992_v58 }
  0x8f   : > { %v382_v59 = vpop.f32.mrf.mxu0 }
  0x90   : > { %403 = vst.msk [vmem:[#allocation2] sm:$0xff] %vm402_vm1, %v382_v59 }
  0x97   : > { %v384_v60 = vpop.f32.mrf.mxu0  ;;  %v719_v61 = vpop.f32.mrf.mxu3  ;;  %v411_v4 = vld [vmem:[#allocation2] sm:$0xff] }
  0x98   : > { %404 = vst.msk [vmem:[#allocation2 + $0x8] sm:$0xff] %vm402_vm1, %v384_v60 }
  0x9f   : > { %v387_v62 = vpop.f32.mrf.mxu0  ;;  %v721_v1 = vpop.f32.mrf.mxu3  ;;  %v412_v14 = vld [vmem:[#allocation2 + $0x8] sm:$0xff] }
  0xa0   : > { %405 = vst.msk [vmem:[#allocation2 + $0x10] sm:$0xff] %vm402_vm1, %v387_v62 }
  0xa7   : > { %v389_v0 = vpop.f32.mrf.mxu0  ;;  %v724_v10 = vpop.f32.mrf.mxu3  ;;  %v413_v21 = vld [vmem:[#allocation2 + $0x10] sm:$0xff] }
  0xa8   : > { %406 = vst.msk [vmem:[#allocation2 + $0x18] sm:$0xff] %vm402_vm1, %v389_v0 }
  0xa9   : > { %v661_v63 = vpop.f32.mrf.mxu1 }
  0xaf   : > { %v392_v7 = vpop.f32.mrf.mxu0  ;;  %v726_v23 = vpop.f32.mrf.mxu3  ;;  %v414_v33 = vld [vmem:[#allocation2 + $0x18] sm:$0xff] }
  0xb0   : > { %v690_v2 = vpop.f32.mrf.mxu2  ;;  %407 = vst.msk [vmem:[#allocation2 + $0x20] sm:$0xff] %vm402_vm1, %v392_v7 }
  0xb1   : > { %v691_v3 = vadd.f32 %v690_v2, %v661_v63  ;;  %v663_v5 = vpop.f32.mrf.mxu1 }
  0xb3   : > { %v720_v6 = vadd.f32 %v719_v61, %v691_v3 }
  0xb5   : > { %v739_v8 = vadd.f32 %v720_v6, %v411_v4 }
  0xb7   : > { %747 = vst.msk [vmem:[#allocation2] sm:$0xff] %vm402_vm1, %v739_v8  ;;  %v394_v15 = vpop.f32.mrf.mxu0  ;;  %v729_v34 = vpop.f32.mrf.mxu3  ;;  %v415_v41 = vld [vmem:[#allocation2 + $0x20] sm:$0xff] }
  0xb8   : > { %v692_v9 = vpop.f32.mrf.mxu2  ;;  %408 = vst.msk [vmem:[#allocation2 + $0x28] sm:$0xff] %vm402_vm1, %v394_v15 }
  0xb9   : > { %v693_v11 = vadd.f32 %v692_v9, %v663_v5  ;;  %v666_v12 = vpop.f32.mrf.mxu1 }
  0xbb   : > { %v722_v13 = vadd.f32 %v721_v1, %v693_v11 }
  0xbd   : > { %v740_v16 = vadd.f32 %v722_v13, %v412_v14 }
  0xbe   : > { %v758_v17 = vld [vmem:[#allocation2] sm:$0xff] }
  0xbf   : > { %v766_v18 = vpack.c.bf16 %v758_v17, %v758_v17  ;;  %748 = vst.msk [vmem:[#allocation2 + $0x8] sm:$0xff] %vm402_vm1, %v740_v16  ;;  %v397_v25 = vpop.f32.mrf.mxu0  ;;  %v731_v46 = vpop.f32.mrf.mxu3  ;;  %v416_v51 = vld [vmem:[#allocation2 + $0x28] sm:$0xff] }
  0xc0   : > { %v695_v19 = vpop.f32.mrf.mxu2  ;;  %409 = vst.msk [vmem:[#allocation2 + $0x30] sm:$0xff] %vm402_vm1, %v397_v25 }
  0xc1   : > { %775 = vst.msk [vmem:[%s1323_s25] sm:$0xf] %vm774_vm2, %v766_v18  ;;  %v696_v20 = vadd.f32 %v695_v19, %v666_v12  ;;  %v668_v22 = vpop.f32.mrf.mxu1 }
  0xc3   : > { %v725_v24 = vadd.f32 %v724_v10, %v696_v20 }
  0xc5   : > { %v741_v26 = vadd.f32 %v725_v24, %v413_v21 }
  0xc6   : > { %v759_v27 = vld [vmem:[#allocation2 + $0x8] sm:$0xff] }
  0xc7   : > { %v767_v28 = vpack.c.bf16 %v759_v27, %v759_v27  ;;  %749 = vst.msk [vmem:[#allocation2 + $0x10] sm:$0xff] %vm402_vm1, %v741_v26  ;;  %v399_v35 = vpop.f32.mrf.mxu0  ;;  %v734_v56 = vpop.f32.mrf.mxu3  ;;  %v417_v59 = vld [vmem:[#allocation2 + $0x30] sm:$0xff] }
  0xc8   : > { %v697_v29 = vpop.f32.mrf.mxu2  ;;  %410 = vst.msk [vmem:[#allocation2 + $0x38] sm:$0xff] %vm402_vm1, %v399_v35 }
  0xc9   : > { %776 = vst.msk [vmem:[%s1323_s25 + $0x4] sm:$0xf] %vm774_vm2, %v767_v28  ;;  %v698_v30 = vadd.f32 %v697_v29, %v668_v22  ;;  %v671_v31 = vpop.f32.mrf.mxu1 }
  0xcb   : > { %v727_v32 = vadd.f32 %v726_v23, %v698_v30 }
  0xcd   : > { %v742_v36 = vadd.f32 %v727_v32, %v414_v33 }
  0xce   : > { %v760_v37 = vld [vmem:[#allocation2 + $0x10] sm:$0xff] }
  0xcf   : > { %v768_v38 = vpack.c.bf16 %v760_v37, %v760_v37  ;;  %750 = vst.msk [vmem:[#allocation2 + $0x18] sm:$0xff] %vm402_vm1, %v742_v36  ;;  %v736_v3 = vpop.f32.mrf.mxu3  ;;  %v418_v5 = vld [vmem:[#allocation2 + $0x38] sm:$0xff] }
  0xd0   : > { %v700_v39 = vpop.f32.mrf.mxu2 }
  0xd1   : > { %777 = vst.msk [vmem:[%s1323_s25 + $0x8] sm:$0xf] %vm774_vm2, %v768_v38  ;;  %v701_v40 = vadd.f32 %v700_v39, %v671_v31  ;;  %v673_v43 = vpop.f32.mrf.mxu1 }
  0xd3   : > { %v730_v42 = vadd.f32 %v729_v34, %v701_v40 }
  0xd5   : > { %v743_v44 = vadd.f32 %v730_v42, %v415_v41 }
  0xd6   : > { %v761_v45 = vld [vmem:[#allocation2 + $0x18] sm:$0xff] }
  0xd7   : > { %v769_v47 = vpack.c.bf16 %v761_v45, %v761_v45  ;;  %751 = vst.msk [vmem:[#allocation2 + $0x20] sm:$0xff] %vm402_vm1, %v743_v44 }
  0xd8   : > { %v702_v48 = vpop.f32.mrf.mxu2 }
  0xd9   : > { %778 = vst.msk [vmem:[%s1323_s25 + $0xc] sm:$0xf] %vm774_vm2, %v769_v47  ;;  %v703_v49 = vadd.f32 %v702_v48, %v673_v43  ;;  %v676_v54 = vpop.f32.mrf.mxu1 }
  0xdb   : > { %v732_v50 = vadd.f32 %v731_v46, %v703_v49 }
  0xdd   : > { %v744_v52 = vadd.f32 %v732_v50, %v416_v51 }
  0xde   : > { %v762_v53 = vld [vmem:[#allocation2 + $0x20] sm:$0xff] }
  0xdf   : > { %v770_v55 = vpack.c.bf16 %v762_v53, %v762_v53  ;;  %752 = vst.msk [vmem:[#allocation2 + $0x28] sm:$0xff] %vm402_vm1, %v744_v52 }
  0xe0   : > { %v705_v57 = vpop.f32.mrf.mxu2 }
  0xe1   : > { %779 = vst.msk [vmem:[%s1323_s25 + $0x10] sm:$0xf] %vm774_vm2, %v770_v55  ;;  %v706_v58 = vadd.f32 %v705_v57, %v676_v54  ;;  %v678_v0 = vpop.f32.mrf.mxu1 }
  0xe3   : > { %v735_v60 = vadd.f32 %v734_v56, %v706_v58 }
  0xe5   : > { %v745_v61 = vadd.f32 %v735_v60, %v417_v59 }
  0xe6   : > { %v763_v62 = vld [vmem:[#allocation2 + $0x28] sm:$0xff] }
  0xe7   : > { %v771_v63 = vpack.c.bf16 %v763_v62, %v763_v62  ;;  %753 = vst.msk [vmem:[#allocation2 + $0x30] sm:$0xff] %vm402_vm1, %v745_v61 }
  0xe8   : > { %v707_v1 = vpop.f32.mrf.mxu2 }
  0xe9   : > { %780 = vst.msk [vmem:[%s1323_s25 + $0x14] sm:$0xf] %vm774_vm2, %v771_v63  ;;  %v708_v2 = vadd.f32 %v707_v1, %v678_v0 }
  0xeb   : > { %v737_v4 = vadd.f32 %v736_v3, %v708_v2 }
  0xed   : > { %v746_v6 = vadd.f32 %v737_v4, %v418_v5 }
  0xee   : > { %v764_v7 = vld [vmem:[#allocation2 + $0x30] sm:$0xff] }
  0xef   : > { %v772_v8 = vpack.c.bf16 %v764_v7, %v764_v7  ;;  %754 = vst.msk [vmem:[#allocation2 + $0x38] sm:$0xff] %vm402_vm1, %v746_v6 }
  0xf1   : > { %781 = vst.msk [vmem:[%s1323_s25 + $0x18] sm:$0xf] %vm774_vm2, %v772_v8 }
  0xf6   : > { %v765_v9 = vld [vmem:[#allocation2 + $0x38] sm:$0xff] }
  0xf7   : > { %v773_v10 = vpack.c.bf16 %v765_v9, %v765_v9 }
  0xf9   : > { %782 = vst.msk [vmem:[%s1323_s25 + $0x1c] sm:$0xf] %vm774_vm2, %v773_v10 }
  0xfa PF: > { %s14_s17 = sadd.s32 1, %s1157_s17   ;;  %s1364_s15 = smov %s1153_s16 }
  0xfb   : > { %p11_p5 = scmp.ge.s32.totalorder %s14_s17, 4   ;;  %s1365_s16 = smov %s1367_s18 }
  0xfd   :  { %13 = sbr.rel (!%p11_p5) target bundleno = 2 (0x2), region = 83 }

// kernel: network_block_forward.7
= control target key start
LH: loop header
LB: loop body
LE: loop exit
PB: predicated region body
PF: predicated region fallthrough
CT: control target
= control target key end

     0   :  { %s1077_s12 = smov 0   ;;  %s1079_s13 = smov 0   ;;  %s1246_s0 = inlined_call_operand.vmem [shape: bf16[128,288], index: 0, kind: input, shape index: {}]   ;;  %s1247_s1 = inlined_call_operand.vmem [shape: bf16[288,32], index: 1, kind: input, shape index: {}]   ;;  %s1248_s2 = inlined_call_operand.vmem [shape: bf16[128,32], index: 2, kind: input, shape index: {}]   ;;  %s1249_s3 = inlined_call_operand.vmem [shape: bf16[128,32], index: 3, kind: output, shape index: {}]  }
   0x1   :  { %s1081_s14 = smov 0  }
   0x2 LB: > { %s32_s15 = sadd.s32 1, %s1051_s13  ;;  %p810_p0 = scmp.ge.s32.totalorder %s1055_s14, 1  ;;  %s1055_s14 = sphi %s1081_s14, %s13_s14   ;;  %s1051_s13 = sphi %s1079_s13, %s1251_s13   ;;  %s1047_s12 = sphi %s1077_s12, %s1250_s12  }
   0x3   : > { %p34_p1 = scmp.ge.s32.totalorder %s32_s15, 2  ;;  %p199_p2 = scmp.lt.s32.totalorder %s1055_s14, 3 }
   0x5   : > { %s1253_s15 = smov (%p34_p1, %s32_s15), 0  ;;  %p200_p3 = pnand %p810_p0, %p199_p2 }
   0x6   : > { %s811_s22 = sshll.u32 (!%p200_p3), %s1047_s12, 3 }
   0x7   : > { %203 = sbr.rel (%p200_p3) target bundleno = 233 (0xe9), region = 32  ;;  %p249_p4 = scmp.lt.s32.totalorder (!%p200_p3), %s811_s22, 15 }
   0xc   : > { %v962_v0 = vld [vmem:[%s1247_s1 + $0x38] sm:$0xff]  ;;  %v972_v2 = vld [vmem:[%s1247_s1 + $0x88] sm:$0xff]  ;;  %v961_v3 = vld [vmem:[%s1247_s1 + $0x30] sm:$0xff]  ;;  %s1255_s22 = smov (!%p249_p4, %s811_s22), 15  ;;  %vm307_vm0 = vcmask 261120   ;;  %vm679_vm1 = vcmask 257024  }
   0xd   : > { %v1101_v1 = vld [vmem:[%s1247_s1 + $0x78] sm:$0xff]  ;;  %557 = vmatpush.bf16.msra.mxu0 %v962_v0  ;;  %992 = vmatpush.bf16.msra.mxu3 %v962_v0  ;;  %v969_v4 = vld [vmem:[%s1247_s1 + $0x70] sm:$0xff]  ;;  %v971_v5 = vld [vmem:[%s1247_s1 + $0x80] sm:$0xff]  ;;  %s1008_s29 = smul.u32 12, %s1255_s22  ;;  %s814_s7 = sshll.u32 %s1255_s22, 2 }
   0xe   : > { %1000 = vmatpush.bf16.msra.mxu1 %v1101_v1  ;;  %621 = vmatpush.bf16.msra.mxu2 %v972_v2  ;;  %v960_v6 = vld [vmem:[%s1247_s1 + $0x28] sm:$0xff]  ;;  %v959_v11 = vld [vmem:[%s1247_s1 + $0x20] sm:$0xff]  ;;  %v958_v13 = vld [vmem:[%s1247_s1 + $0x18] sm:$0xff]  ;;  %s275_s11 = scalar_lea.vmem %s1248_s2, %s814_s7  ;;  %s1211_s16 = scalar_lea.vmem %s1249_s3, %s814_s7 }
   0xf   : > { %v968_v7 = vld [vmem:[%s1247_s1 + $0x68] sm:$0xff]  ;;  %s1128_s9 = scalar_lea.vmem %s1246_s0, %s1008_s29  ;;  %v967_v12 = vld [vmem:[%s1247_s1 + $0x60] sm:$0xff]  ;;  %v966_v14 = vld [vmem:[%s1247_s1 + $0x58] sm:$0xff] }
  0x10   : > { %v827_v8 = vld [vmem:[%s1128_s9 + $0x8] sm:$0xf]  ;;  %v945_v9 = vld [vmem:[%s1128_s9 + $0x10] sm:$0xf0]  ;;  %v839_v17 = vld [vmem:[%s1128_s9 + $0x20] sm:$0xf] }
  0x11   : > { %558 = vmatpush.bf16.msra.mxu0 %v961_v3  ;;  %993 = vmatpush.bf16.msra.mxu3 %v961_v3  ;;  %v828_v10 = vor.u32 %v945_v9, %v827_v8  ;;  %v957_v15 = vld [vmem:[%s1247_s1 + $0x10] sm:$0xff]  ;;  %v948_v18 = vld [vmem:[%s1128_s9 + $0x28] sm:$0xf0]  ;;  %v955_v22 = vld [vmem:[%s1247_s1] sm:$0xff] }
  0x12   : > { %1001 = vmatpush.bf16.msra.mxu1 %v969_v4  ;;  %622 = vmatpush.bf16.msra.mxu2 %v971_v5  ;;  %v965_v16 = vld [vmem:[%s1247_s1 + $0x50] sm:$0xff]  ;;  %v956_v19 = vld [vmem:[%s1247_s1 + $0x8] sm:$0xff]  ;;  %v840_v21 = vor.u32 %v948_v18, %v839_v17  ;;  %v831_v23 = vld [vmem:[%s1128_s9 + $0x18] sm:$0xf] }
  0x13   : > { %v964_v20 = vld [vmem:[%s1247_s1 + $0x48] sm:$0xff]  ;;  %v947_v24 = vld [vmem:[%s1128_s9 + $0x20] sm:$0xf0]  ;;  %v819_v25 = vld [vmem:[%s1128_s9] sm:$0xf] }
  0x14   : > { %v944_v26 = vld [vmem:[%s1128_s9 + $0x8] sm:$0xf0]  ;;  %v963_v27 = vld [vmem:[%s1247_s1 + $0x40] sm:$0xff]  ;;  %v946_v28 = vld [vmem:[%s1128_s9 + $0x1c] sm:$0xf]  ;;  %v832_v30 = vor.u32 %v947_v24, %v831_v23 }
  0x15   : > { %559 = vmatpush.bf16.msra.mxu0 %v960_v6  ;;  %994 = vmatpush.bf16.msra.mxu3 %v960_v6  ;;  %v833_v29 = vld [vmem:[%s1128_s9 + $0x24] sm:$0xf0]  ;;  %v820_v31 = vor.u32 %v944_v26, %v819_v25  ;;  %v851_v33 = vld [vmem:[%s1128_s9 + $0x38] sm:$0xf]  ;;  %v951_v34 = vld [vmem:[%s1128_s9 + $0x40] sm:$0xf0] }
  0x16   : > { %1002 = vmatpush.bf16.msra.mxu1 %v968_v7  ;;  %937 = vmatmul.msk.bf16.vlgmr.msra.gmra.mxu2 %vm307_vm0, %v828_v10  ;;  %v836_v32 = vor.u32 %v946_v28, %v833_v29  ;;  %v852_v35 = vor.u32 %v951_v34, %v851_v33  ;;  %v843_v36 = vld [vmem:[%s1128_s9 + $0x30] sm:$0xf]  ;;  %v950_v37 = vld [vmem:[%s1128_s9 + $0x38] sm:$0xf0]  ;;  %v949_v38 = vld [vmem:[%s1128_s9 + $0x34] sm:$0xf] }
  0x17   : > { %v845_v39 = vld [vmem:[%s1128_s9 + $0x3c] sm:$0xf0]  ;;  %v844_v40 = vor.u32 %v950_v37, %v843_v36  ;;  %v863_v42 = vld [vmem:[%s1128_s9 + $0x50] sm:$0xf]  ;;  %v954_v43 = vld [vmem:[%s1128_s9 + $0x58] sm:$0xf0] }
  0x18   : > { %v848_v41 = vor.u32 %v949_v38, %v845_v39  ;;  %v864_v44 = vor.u32 %v954_v43, %v863_v42  ;;  %v943_v45 = vld [vmem:[%s1128_s9 + $0x4] sm:$0xf]  ;;  %v821_v46 = vld [vmem:[%s1128_s9 + $0xc] sm:$0xf0]  ;;  %v855_v48 = vld [vmem:[%s1128_s9 + $0x48] sm:$0xf] }
  0x19   : > { %560 = vmatpush.bf16.msra.mxu0 %v959_v11  ;;  %995 = vmatpush.bf16.msra.mxu3 %v959_v11  ;;  %v824_v47 = vor.u32 %v943_v45, %v821_v46  ;;  %v953_v49 = vld [vmem:[%s1128_s9 + $0x50] sm:$0xf0]  ;;  %v952_v50 = vld [vmem:[%s1128_s9 + $0x4c] sm:$0xf]  ;;  %v857_v51 = vld [vmem:[%s1128_s9 + $0x54] sm:$0xf0] }
  0x1a   : > { %1003 = vmatpush.bf16.msra.mxu1 %v967_v12  ;;  %v856_v52 = vor.u32 %v953_v49, %v855_v48  ;;  %v860_v53 = vor.u32 %v952_v50, %v857_v51  ;;  %v989_v54 = vld [vmem:[%s275_s11 + $0x8] sm:$0xff]   ;;  %v990_v58 = vld [vmem:[%s275_s11 + $0x10] sm:$0xff]   ;;  %v974_v61 = vld [vmem:[%s275_s11] sm:$0xff]  }
  0x1b   : > { %v979_v55 = vunpack.c.l.bf16 %v989_v54  ;;  %v980_v56 = vunpack.c.h.bf16 %v989_v54  ;;  %v983_v59 = vunpack.c.l.bf16 %v990_v58  ;;  %v975_v62 = vunpack.c.l.bf16 %v974_v61  ;;  %v991_v3 = vld [vmem:[%s275_s11 + $0x18] sm:$0xff]  }
  0x1c   : > { %v984_v63 = vunpack.c.h.bf16 %v990_v58  ;;  %v976_v2 = vunpack.c.h.bf16 %v974_v61 }
  0x1d   : > { %561 = vmatpush.bf16.msra.mxu0 %v958_v13  ;;  %996 = vmatpush.bf16.msra.mxu3 %v958_v13  ;;  %310 = vst.msk [vmem:[#allocation2 + $0x10] sm:$0xff] %vm307_vm0, %v979_v55 }
  0x1e   : > { %1004 = vmatpush.bf16.msra.mxu1 %v966_v14  ;;  %311 = vst.msk [vmem:[#allocation2 + $0x18] sm:$0xff] %vm307_vm0, %v980_v56 }
  0x1f   : > { %312 = vst.msk [vmem:[#allocation2 + $0x20] sm:$0xff] %vm307_vm0, %v983_v59 }
  0x20   : > { %308 = vst.msk [vmem:[#allocation2] sm:$0xff] %vm307_vm0, %v975_v62 }
  0x21   : > { %562 = vmatpush.bf16.msra.mxu0 %v957_v15  ;;  %997 = vmatpush.bf16.msra.mxu3 %v957_v15  ;;  %313 = vst.msk [vmem:[#allocation2 + $0x28] sm:$0xff] %vm307_vm0, %v984_v63 }
  0x22   : > { %1005 = vmatpush.bf16.msra.mxu1 %v965_v16  ;;  %309 = vst.msk [vmem:[#allocation2 + $0x8] sm:$0xff] %vm307_vm0, %v976_v2 }
  0x25   : > { %563 = vmatpush.bf16.msra.mxu0 %v956_v19  ;;  %998 = vmatpush.bf16.msra.mxu3 %v956_v19 }
  0x26   : > { %1006 = vmatpush.bf16.msra.mxu1 %v964_v20  ;;  %938 = vmatmul.msk.bf16.gmra.mxu2 %vm307_vm0, %v840_v21  ;;  %v320_v26 = vld [vmem:[#allocation2 + $0x20] sm:$0xff] }
  0x27   : > { %v316_v36 = vld [vmem:[#allocation2] sm:$0xff] }
  0x28   : > { %v321_v39 = vld [vmem:[#allocation2 + $0x28] sm:$0xff] }
  0x29   : > { %564 = vmatpush.bf16.msra.mxu0 %v955_v22  ;;  %999 = vmatpush.bf16.msra.mxu3 %v955_v22  ;;  %v317_v50 = vld [vmem:[#allocation2 + $0x8] sm:$0xff] }
  0x2a   : > { %1007 = vmatpush.bf16.msra.mxu1 %v963_v27 }
  0x2c   : > { %570 = vmatmul.bf16.vlgmr.msra.gmra.mxu3 %v832_v30  ;;  %565 = vmatmul.bf16.vlgmr.msra.gmra.mxu0 %v820_v31 }
  0x2d   : > { %586 = vmatpush.bf16.msrb.mxu0 %v1101_v1  ;;  %599 = vmatmul.bf16.vlgmr.msra.gmra.mxu1 %v836_v32 }
  0x31   : > { %587 = vmatpush.bf16.msrb.mxu0 %v969_v4  ;;  %v987_v4 = vunpack.c.l.bf16 %v991_v3 }
  0x33   : > { %314 = vst.msk [vmem:[#allocation2 + $0x30] sm:$0xff] %vm307_vm0, %v987_v4 }
  0x35   : > { %588 = vmatpush.bf16.msrb.mxu0 %v968_v7  ;;  %v318_v7 = vld [vmem:[#allocation2 + $0x10] sm:$0xff] }
  0x36   : > { %939 = vmatmul.msk.bf16.gmra.mxu2 %vm307_vm0, %v852_v35 }
  0x39   : > { %589 = vmatpush.bf16.msrb.mxu0 %v967_v12  ;;  %v988_v12 = vunpack.c.h.bf16 %v991_v3 }
  0x3b   : > { %315 = vst.msk [vmem:[#allocation2 + $0x38] sm:$0xff] %vm307_vm0, %v988_v12 }
  0x3c   : > { %575 = vmatmul.bf16.gmra.mxu3 %v844_v40 }
  0x3d   : > { %590 = vmatpush.bf16.msrb.mxu0 %v966_v14  ;;  %604 = vmatmul.bf16.gmra.mxu1 %v848_v41 }
  0x41   : > { %591 = vmatpush.bf16.msrb.mxu0 %v965_v16  ;;  %v319_v16 = vld [vmem:[#allocation2 + $0x18] sm:$0xff] }
  0x45   : > { %592 = vmatpush.bf16.msrb.mxu0 %v964_v20 }
  0x46   : > { %940 = vmatmul.msk.bf16.gmra.mxu2 %vm307_vm0, %v864_v44 }
  0x49   : > { %593 = vmatpush.bf16.msrb.mxu0 %v963_v27 }
  0x4c   : > { %594 = vmatmul.bf16.vlgmr.msrb.gmra.mxu0 %v824_v47  ;;  %580 = vmatmul.bf16.gmra.mxu3 %v856_v52 }
  0x4d   : > { %609 = vmatmul.bf16.gmra.mxu1 %v860_v53  ;;  %v322_v53 = vld [vmem:[#allocation2 + $0x30] sm:$0xff] }
  0x99   : > { %v624_v57 = vpop.f32.mrf.mxu2 }
  0xa1   : > { %v1198_v60 = vpop.f32.mrf.mxu2 }
  0xa9   : > { %v629_v0 = vpop.f32.mrf.mxu2  ;;  %v566_v11 = vpop.f32.mrf.mxu0 }
  0xaa   : > { %v600_v1 = vpop.f32.mrf.mxu1 }
  0xaf   : > { %v571_v5 = vpop.f32.mrf.mxu3 }
  0xb0   : > { %v601_v6 = vadd.f32 %v600_v1, %v571_v5  ;;  %v323_v1 = vld [vmem:[#allocation2 + $0x38] sm:$0xff] }
  0xb1   : > { %v631_v8 = vpop.f32.mrf.mxu2  ;;  %v568_v21 = vpop.f32.mrf.mxu0 }
  0xb2   : > { %v630_v9 = vadd.f32 %v629_v0, %v601_v6  ;;  %v602_v10 = vpop.f32.mrf.mxu1 }
  0xb4   : > { %v646_v13 = vadd.f32 %v630_v9, %v318_v7 }
  0xb6   : > { %654 = vst.msk [vmem:[#allocation2 + $0x10] sm:$0xff] %vm307_vm0, %v646_v13 }
  0xb7   : > { %v573_v14 = vpop.f32.mrf.mxu3 }
  0xb8   : > { %v603_v15 = vadd.f32 %v602_v10, %v573_v14 }
  0xb9   : > { %v634_v19 = vpop.f32.mrf.mxu2 }
  0xba   : > { %v632_v17 = vadd.f32 %v631_v8, %v603_v15  ;;  %v605_v18 = vpop.f32.mrf.mxu1 }
  0xbc   : > { %v647_v20 = vadd.f32 %v632_v17, %v319_v16 }
  0xbd   : > { %v665_v22 = vld [vmem:[#allocation2 + $0x10] sm:$0xff] }
  0xbe   : > { %v673_v23 = vpack.c.bf16 %v665_v22, %v665_v22  ;;  %655 = vst.msk [vmem:[#allocation2 + $0x18] sm:$0xff] %vm307_vm0, %v647_v20 }
  0xbf   : > { %v576_v24 = vpop.f32.mrf.mxu3 }
  0xc0   : > { %682 = vst.msk [vmem:[%s1211_s16 + $0x8] sm:$0xf] %vm679_vm1, %v673_v23  ;;  %v606_v25 = vadd.f32 %v605_v18, %v576_v24 }
  0xc1   : > { %v636_v31 = vpop.f32.mrf.mxu2 }
  0xc2   : > { %v635_v27 = vadd.f32 %v634_v19, %v606_v25  ;;  %v607_v28 = vpop.f32.mrf.mxu1 }
  0xc4   : > { %v648_v29 = vadd.f32 %v635_v27, %v320_v26 }
  0xc5   : > { %v666_v30 = vld [vmem:[#allocation2 + $0x18] sm:$0xff] }
  0xc6   : > { %v674_v32 = vpack.c.bf16 %v666_v30, %v666_v30  ;;  %656 = vst.msk [vmem:[#allocation2 + $0x20] sm:$0xff] %vm307_vm0, %v648_v29 }
  0xc7   : > { %v578_v35 = vpop.f32.mrf.mxu3 }
  0xc8   : > { %683 = vst.msk [vmem:[%s1211_s16 + $0xc] sm:$0xf] %vm679_vm1, %v674_v32  ;;  %v608_v37 = vadd.f32 %v607_v28, %v578_v35 }
  0xc9   : > { %v595_v33 = vpop.f32.mrf.mxu0  ;;  %v639_v47 = vpop.f32.mrf.mxu2 }
  0xca   : > { %v596_v34 = vadd.f32 %v595_v33, %v566_v11  ;;  %v637_v40 = vadd.f32 %v636_v31, %v608_v37  ;;  %v610_v44 = vpop.f32.mrf.mxu1 }
  0xcc   : > { %v625_v38 = vadd.f32 %v624_v57, %v596_v34  ;;  %v649_v42 = vadd.f32 %v637_v40, %v321_v39 }
  0xcd   : > { %v667_v43 = vld [vmem:[#allocation2 + $0x20] sm:$0xff] }
  0xce   : > { %v644_v41 = vadd.f32 %v625_v38, %v316_v36  ;;  %v675_v45 = vpack.c.bf16 %v667_v43, %v667_v43  ;;  %657 = vst.msk [vmem:[#allocation2 + $0x28] sm:$0xff] %vm307_vm0, %v649_v42 }
  0xcf   : > { %v581_v49 = vpop.f32.mrf.mxu3 }
  0xd0   : > { %652 = vst.msk [vmem:[#allocation2] sm:$0xff] %vm307_vm0, %v644_v41  ;;  %v611_v51 = vadd.f32 %v610_v44, %v581_v49 }
  0xd1   : > { %v597_v46 = vpop.f32.mrf.mxu0  ;;  %684 = vst.msk [vmem:[%s1211_s16 + $0x10] sm:$0xf] %vm679_vm1, %v675_v45  ;;  %v641_v0 = vpop.f32.mrf.mxu2 }
  0xd2   : > { %v598_v48 = vadd.f32 %v597_v46, %v568_v21  ;;  %v640_v54 = vadd.f32 %v639_v47, %v611_v51  ;;  %v612_v62 = vpop.f32.mrf.mxu1 }
  0xd4   : > { %v627_v52 = vadd.f32 %v1198_v60, %v598_v48  ;;  %v650_v57 = vadd.f32 %v640_v54, %v322_v53 }
  0xd5   : > { %v668_v59 = vld [vmem:[#allocation2 + $0x28] sm:$0xff] }
  0xd6   : > { %v645_v55 = vadd.f32 %v627_v52, %v317_v50  ;;  %v676_v61 = vpack.c.bf16 %v668_v59, %v668_v59  ;;  %658 = vst.msk [vmem:[#allocation2 + $0x30] sm:$0xff] %vm307_vm0, %v650_v57 }
  0xd7   : > { %v663_v56 = vld [vmem:[#allocation2] sm:$0xff]  ;;  %v583_v63 = vpop.f32.mrf.mxu3 }
  0xd8   : > { %v671_v58 = vpack.c.bf16 %v663_v56, %v663_v56  ;;  %653 = vst.msk [vmem:[#allocation2 + $0x8] sm:$0xff] %vm307_vm0, %v645_v55  ;;  %v613_v60 = vadd.f32 %v612_v62, %v583_v63 }
  0xd9   : > { %685 = vst.msk [vmem:[%s1211_s16 + $0x14] sm:$0xf] %vm679_vm1, %v676_v61 }
  0xda   : > { %680 = vst.msk [vmem:[%s1211_s16] sm:$0xf] %vm679_vm1, %v671_v58  ;;  %v642_v2 = vadd.f32 %v641_v0, %v613_v60 }
  0xdc   : > { %v651_v4 = vadd.f32 %v642_v2, %v323_v1 }
  0xdd   : > { %v669_v6 = vld [vmem:[#allocation2 + $0x30] sm:$0xff] }
  0xde   : > { %v677_v7 = vpack.c.bf16 %v669_v6, %v669_v6  ;;  %659 = vst.msk [vmem:[#allocation2 + $0x38] sm:$0xff] %vm307_vm0, %v651_v4 }
  0xdf   : > { %v664_v3 = vld [vmem:[#allocation2 + $0x8] sm:$0xff] }
  0xe0   : > { %v672_v5 = vpack.c.bf16 %v664_v3, %v664_v3  ;;  %686 = vst.msk [vmem:[%s1211_s16 + $0x18] sm:$0xf] %vm679_vm1, %v677_v7 }
  0xe2   : > { %681 = vst.msk [vmem:[%s1211_s16 + $0x4] sm:$0xf] %vm679_vm1, %v672_v5 }
  0xe5   : > { %v670_v8 = vld [vmem:[#allocation2 + $0x38] sm:$0xff] }
  0xe6   : > { %v678_v9 = vpack.c.bf16 %v670_v8, %v670_v8 }
  0xe8   : > { %687 = vst.msk [vmem:[%s1211_s16 + $0x1c] sm:$0xf] %vm679_vm1, %v678_v9 }
  0xe9 PF: > { %s13_s14 = sadd.s32 1, %s1055_s14   ;;  %s1250_s12 = smov %s1051_s13 }
  0xea   : > { %p10_p5 = scmp.ge.s32.totalorder %s13_s14, 4   ;;  %s1251_s13 = smov %s1253_s15 }
  0xec   :  { %12 = sbr.rel (!%p10_p5) target bundleno = 2 (0x2), region = 76 }

// kernel: network_block_forward.6
= control target key start
LH: loop header
LB: loop body
LE: loop exit
PB: predicated region body
PF: predicated region fallthrough
CT: control target
= control target key end

     0   :  { %s1114_s15 = smov 0   ;;  %s1116_s16 = smov 0   ;;  %s1302_s0 = inlined_call_operand.vmem [shape: bf16[128,288], index: 0, kind: input, shape index: {}]   ;;  %s1303_s1 = inlined_call_operand.vmem [shape: bf16[288,32], index: 1, kind: input, shape index: {}]   ;;  %s1304_s2 = inlined_call_operand.vmem [shape: f32[1,32], index: 2, kind: input, shape index: {}]   ;;  %s1305_s3 = inlined_call_operand.vmem [shape: f32[1,32], index: 3, kind: input, shape index: {}]   ;;  %s1306_s4 = inlined_call_operand.vmem [shape: bf16[128,32], index: 4, kind: output, shape index: {}]  }
   0x1   :  { %s1118_s17 = smov 0  }
   0x2 LB: > { %s33_s18 = sadd.s32 1, %s1082_s16  ;;  %p859_p0 = scmp.ge.s32.totalorder %s1086_s17, 1  ;;  %s1086_s17 = sphi %s1118_s17, %s14_s17   ;;  %s1082_s16 = sphi %s1116_s16, %s1308_s16   ;;  %s1078_s15 = sphi %s1114_s15, %s1307_s15  }
   0x3   : > { %p35_p1 = scmp.ge.s32.totalorder %s33_s18, 2  ;;  %p224_p2 = scmp.lt.s32.totalorder %s1086_s17, 3 }
   0x5   : > { %s1310_s18 = smov (%p35_p1, %s33_s18), 0  ;;  %p225_p3 = pnand %p859_p0, %p224_p2 }
   0x6   : > { %s860_s25 = sshll.u32 (!%p225_p3), %s1078_s15, 3 }
   0x7   : > { %228 = sbr.rel (%p225_p3) target bundleno = 239 (0xef), region = 36  ;;  %p274_p4 = scmp.lt.s32.totalorder (!%p225_p3), %s860_s25, 15 }
   0xc   : > { %v1009_v0 = vld [vmem:[%s1303_s1 + $0x38] sm:$0xff]  ;;  %v1019_v2 = vld [vmem:[%s1303_s1 + $0x88] sm:$0xff]  ;;  %v1008_v3 = vld [vmem:[%s1303_s1 + $0x30] sm:$0xff]  ;;  %s1312_s25 = smov (!%p274_p4, %s860_s25), 15  ;;  %vm313_vm0 = vcmask 261120   ;;  %v1088_v54 = vmov 0.0  }
   0xd   : > { %v1138_v1 = vld [vmem:[%s1303_s1 + $0x78] sm:$0xff]  ;;  %563 = vmatpush.bf16.msra.mxu0 %v1009_v0  ;;  %1020 = vmatpush.bf16.msra.mxu3 %v1009_v0  ;;  %v1016_v4 = vld [vmem:[%s1303_s1 + $0x70] sm:$0xff]  ;;  %v1018_v5 = vld [vmem:[%s1303_s1 + $0x80] sm:$0xff]  ;;  %s1036_s6 = smul.u32 12, %s1312_s25  ;;  %316 = vst.msk [vmem:[#allocation2 + $0x10] sm:$0xff] %vm313_vm0, %v1088_v54  ;;  %s863_s19 = sshll.u32 %s1312_s25, 2 }
   0xe   : > { %1028 = vmatpush.bf16.msra.mxu1 %v1138_v1  ;;  %627 = vmatpush.bf16.msra.mxu2 %v1019_v2  ;;  %v1007_v6 = vld [vmem:[%s1303_s1 + $0x28] sm:$0xff]  ;;  %v1006_v11 = vld [vmem:[%s1303_s1 + $0x20] sm:$0xff]  ;;  %v1005_v13 = vld [vmem:[%s1303_s1 + $0x18] sm:$0xff]  ;;  %314 = vst.msk [vmem:[#allocation2] sm:$0xff] %vm313_vm0, %v1088_v54  ;;  %s1254_s22 = scalar_lea.vmem %s1306_s4, %s863_s19  ;;  %vm717_vm1 = vcmask 257024  }
   0xf   : > { %v1015_v7 = vld [vmem:[%s1303_s1 + $0x68] sm:$0xff]  ;;  %s1165_s13 = scalar_lea.vmem %s1302_s0, %s1036_s6  ;;  %v1014_v12 = vld [vmem:[%s1303_s1 + $0x60] sm:$0xff]  ;;  %v1013_v14 = vld [vmem:[%s1303_s1 + $0x58] sm:$0xff]  ;;  %315 = vst.msk [vmem:[#allocation2 + $0x8] sm:$0xff] %vm313_vm0, %v1088_v54 }
  0x10   : > { %v874_v8 = vld [vmem:[%s1165_s13 + $0x8] sm:$0xf]  ;;  %v992_v9 = vld [vmem:[%s1165_s13 + $0x10] sm:$0xf0]  ;;  %v886_v17 = vld [vmem:[%s1165_s13 + $0x20] sm:$0xf] }
  0x11   : > { %564 = vmatpush.bf16.msra.mxu0 %v1008_v3  ;;  %1021 = vmatpush.bf16.msra.mxu3 %v1008_v3  ;;  %v875_v10 = vor.u32 %v992_v9, %v874_v8  ;;  %v1004_v15 = vld [vmem:[%s1303_s1 + $0x10] sm:$0xff]  ;;  %v995_v18 = vld [vmem:[%s1165_s13 + $0x28] sm:$0xf0]  ;;  %v1002_v22 = vld [vmem:[%s1303_s1] sm:$0xff]  ;;  %317 = vst.msk [vmem:[#allocation2 + $0x18] sm:$0xff] %vm313_vm0, %v1088_v54 }
  0x12   : > { %1029 = vmatpush.bf16.msra.mxu1 %v1016_v4  ;;  %628 = vmatpush.bf16.msra.mxu2 %v1018_v5  ;;  %v1012_v16 = vld [vmem:[%s1303_s1 + $0x50] sm:$0xff]  ;;  %v1003_v19 = vld [vmem:[%s1303_s1 + $0x8] sm:$0xff]  ;;  %v887_v21 = vor.u32 %v995_v18, %v886_v17  ;;  %v878_v23 = vld [vmem:[%s1165_s13 + $0x18] sm:$0xf]  ;;  %318 = vst.msk [vmem:[#allocation2 + $0x20] sm:$0xff] %vm313_vm0, %v1088_v54 }
  0x13   : > { %v1011_v20 = vld [vmem:[%s1303_s1 + $0x48] sm:$0xff]  ;;  %v994_v24 = vld [vmem:[%s1165_s13 + $0x20] sm:$0xf0]  ;;  %v866_v25 = vld [vmem:[%s1165_s13] sm:$0xf]  ;;  %319 = vst.msk [vmem:[#allocation2 + $0x28] sm:$0xff] %vm313_vm0, %v1088_v54 }
  0x14   : > { %v991_v26 = vld [vmem:[%s1165_s13 + $0x8] sm:$0xf0]  ;;  %v1010_v27 = vld [vmem:[%s1303_s1 + $0x40] sm:$0xff]  ;;  %v993_v28 = vld [vmem:[%s1165_s13 + $0x1c] sm:$0xf]  ;;  %v879_v30 = vor.u32 %v994_v24, %v878_v23  ;;  %320 = vst.msk [vmem:[#allocation2 + $0x30] sm:$0xff] %vm313_vm0, %v1088_v54 }
  0x15   : > { %565 = vmatpush.bf16.msra.mxu0 %v1007_v6  ;;  %1022 = vmatpush.bf16.msra.mxu3 %v1007_v6  ;;  %v880_v29 = vld [vmem:[%s1165_s13 + $0x24] sm:$0xf0]  ;;  %v867_v31 = vor.u32 %v991_v26, %v866_v25  ;;  %v898_v33 = vld [vmem:[%s1165_s13 + $0x38] sm:$0xf]  ;;  %v998_v34 = vld [vmem:[%s1165_s13 + $0x40] sm:$0xf0] }
  0x16   : > { %1030 = vmatpush.bf16.msra.mxu1 %v1015_v7  ;;  %984 = vmatmul.msk.bf16.vlgmr.msra.gmra.mxu2 %vm313_vm0, %v875_v10  ;;  %v883_v32 = vor.u32 %v993_v28, %v880_v29  ;;  %v899_v35 = vor.u32 %v998_v34, %v898_v33  ;;  %v890_v36 = vld [vmem:[%s1165_s13 + $0x30] sm:$0xf]  ;;  %v997_v37 = vld [vmem:[%s1165_s13 + $0x38] sm:$0xf0]  ;;  %v996_v38 = vld [vmem:[%s1165_s13 + $0x34] sm:$0xf] }
  0x17   : > { %v892_v39 = vld [vmem:[%s1165_s13 + $0x3c] sm:$0xf0]  ;;  %v891_v40 = vor.u32 %v997_v37, %v890_v36  ;;  %v910_v42 = vld [vmem:[%s1165_s13 + $0x50] sm:$0xf]  ;;  %v1001_v43 = vld [vmem:[%s1165_s13 + $0x58] sm:$0xf0] }
  0x18   : > { %v895_v41 = vor.u32 %v996_v38, %v892_v39  ;;  %v911_v44 = vor.u32 %v1001_v43, %v910_v42  ;;  %v990_v45 = vld [vmem:[%s1165_s13 + $0x4] sm:$0xf]  ;;  %v868_v46 = vld [vmem:[%s1165_s13 + $0xc] sm:$0xf0]  ;;  %v902_v48 = vld [vmem:[%s1165_s13 + $0x48] sm:$0xf] }
  0x19   : > { %566 = vmatpush.bf16.msra.mxu0 %v1006_v11  ;;  %1023 = vmatpush.bf16.msra.mxu3 %v1006_v11  ;;  %v871_v47 = vor.u32 %v990_v45, %v868_v46  ;;  %v1000_v49 = vld [vmem:[%s1165_s13 + $0x50] sm:$0xf0]  ;;  %v999_v50 = vld [vmem:[%s1165_s13 + $0x4c] sm:$0xf]  ;;  %v904_v51 = vld [vmem:[%s1165_s13 + $0x54] sm:$0xf0] }
  0x1a   : > { %1031 = vmatpush.bf16.msra.mxu1 %v1014_v12  ;;  %v903_v52 = vor.u32 %v1000_v49, %v902_v48  ;;  %v907_v53 = vor.u32 %v999_v50, %v904_v51  ;;  %321 = vst.msk [vmem:[#allocation2 + $0x38] sm:$0xff] %vm313_vm0, %v1088_v54  ;;  %v324_v61 = vld [vmem:[#allocation2 + $0x10] sm:$0xff]  ;;  %v325_v5 = vld [vmem:[#allocation2 + $0x18] sm:$0xff]  ;;  %v1240_v6 = vld [vmem:[%s1304_s2] ss:$0 sm:$0xff] }
  0x1b   : > { %v1245_v10 = vld [vmem:[%s1305_s3] ss:$0 sm:$0xff]  ;;  %v327_v34 = vld [vmem:[#allocation2 + $0x28] sm:$0xff]  ;;  %v328_v51 = vld [vmem:[#allocation2 + $0x30] sm:$0xff] }
  0x1c   : > { %v326_v18 = vld [vmem:[#allocation2 + $0x20] sm:$0xff] }
  0x1d   : > { %567 = vmatpush.bf16.msra.mxu0 %v1005_v13  ;;  %1024 = vmatpush.bf16.msra.mxu3 %v1005_v13 }
  0x1e   : > { %1032 = vmatpush.bf16.msra.mxu1 %v1013_v14 }
  0x21   : > { %568 = vmatpush.bf16.msra.mxu0 %v1004_v15  ;;  %1025 = vmatpush.bf16.msra.mxu3 %v1004_v15 }
  0x22   : > { %1033 = vmatpush.bf16.msra.mxu1 %v1012_v16 }
  0x25   : > { %569 = vmatpush.bf16.msra.mxu0 %v1003_v19  ;;  %1026 = vmatpush.bf16.msra.mxu3 %v1003_v19 }
  0x26   : > { %1034 = vmatpush.bf16.msra.mxu1 %v1011_v20  ;;  %985 = vmatmul.msk.bf16.gmra.mxu2 %vm313_vm0, %v887_v21 }
  0x29   : > { %570 = vmatpush.bf16.msra.mxu0 %v1002_v22  ;;  %1027 = vmatpush.bf16.msra.mxu3 %v1002_v22 }
  0x2a   : > { %1035 = vmatpush.bf16.msra.mxu1 %v1010_v27 }
  0x2c   : > { %576 = vmatmul.bf16.vlgmr.msra.gmra.mxu3 %v879_v30  ;;  %571 = vmatmul.bf16.vlgmr.msra.gmra.mxu0 %v867_v31  ;;  %v322_v31 = vld [vmem:[#allocation2] sm:$0xff] }
  0x2d   : > { %592 = vmatpush.bf16.msrb.mxu0 %v1138_v1  ;;  %605 = vmatmul.bf16.vlgmr.msra.gmra.mxu1 %v883_v32 }
  0x31   : > { %593 = vmatpush.bf16.msrb.mxu0 %v1016_v4 }
  0x35   : > { %594 = vmatpush.bf16.msrb.mxu0 %v1015_v7 }
  0x36   : > { %986 = vmatmul.msk.bf16.gmra.mxu2 %vm313_vm0, %v899_v35 }
  0x39   : > { %595 = vmatpush.bf16.msrb.mxu0 %v1014_v12 }
  0x3c   : > { %581 = vmatmul.bf16.gmra.mxu3 %v891_v40 }
  0x3d   : > { %596 = vmatpush.bf16.msrb.mxu0 %v1013_v14  ;;  %610 = vmatmul.bf16.gmra.mxu1 %v895_v41 }
  0x41   : > { %597 = vmatpush.bf16.msrb.mxu0 %v1012_v16 }
  0x45   : > { %598 = vmatpush.bf16.msrb.mxu0 %v1011_v20 }
  0x46   : > { %987 = vmatmul.msk.bf16.gmra.mxu2 %vm313_vm0, %v911_v44 }
  0x49   : > { %599 = vmatpush.bf16.msrb.mxu0 %v1010_v27 }
  0x4c   : > { %600 = vmatmul.bf16.vlgmr.msrb.gmra.mxu0 %v871_v47  ;;  %586 = vmatmul.bf16.gmra.mxu3 %v903_v52  ;;  %v323_v47 = vld [vmem:[#allocation2 + $0x8] sm:$0xff] }
  0x4d   : > { %615 = vmatmul.bf16.gmra.mxu1 %v907_v53 }
  0x99   : > { %v630_v55 = vpop.f32.mrf.mxu2 }
  0xa1   : > { %v1234_v56 = vpop.f32.mrf.mxu2 }
  0xa9   : > { %v635_v57 = vpop.f32.mrf.mxu2  ;;  %v572_v1 = vpop.f32.mrf.mxu0 }
  0xaa   : > { %v606_v58 = vpop.f32.mrf.mxu1 }
  0xaf   : > { %v577_v59 = vpop.f32.mrf.mxu3 }
  0xb0   : > { %v607_v60 = vadd.f32 %v606_v58, %v577_v59 }
  0xb1   : > { %v637_v62 = vpop.f32.mrf.mxu2  ;;  %v574_v12 = vpop.f32.mrf.mxu0 }
  0xb2   : > { %v636_v63 = vadd.f32 %v635_v57, %v607_v60  ;;  %v608_v0 = vpop.f32.mrf.mxu1 }
  0xb4   : > { %v652_v2 = vadd.f32 %v636_v63, %v324_v61 }
  0xb6   : > { %660 = vst.msk [vmem:[#allocation2 + $0x10] sm:$0xff] %vm313_vm0, %v652_v2 }
  0xb7   : > { %v579_v3 = vpop.f32.mrf.mxu3 }
  0xb8   : > { %v609_v4 = vadd.f32 %v608_v0, %v579_v3 }
  0xb9   : > { %v640_v9 = vpop.f32.mrf.mxu2 }
  0xba   : > { %v638_v7 = vadd.f32 %v637_v62, %v609_v4  ;;  %v611_v8 = vpop.f32.mrf.mxu1  ;;  %v329_v4 = vld [vmem:[#allocation2 + $0x38] sm:$0xff] }
  0xbc   : > { %v653_v11 = vadd.f32 %v638_v7, %v325_v5 }
  0xbd   : > { %v671_v13 = vld [vmem:[#allocation2 + $0x10] sm:$0xff] }
  0xbe   : > { %v683_v14 = vmul.f32 %v1240_v6, %v671_v13  ;;  %661 = vst.msk [vmem:[#allocation2 + $0x18] sm:$0xff] %vm313_vm0, %v653_v11 }
  0xbf   : > { %v582_v15 = vpop.f32.mrf.mxu3 }
  0xc0   : > { %v695_v16 = vadd.f32 %v1245_v10, %v683_v14  ;;  %v612_v17 = vadd.f32 %v611_v8, %v582_v15 }
  0xc1   : > { %v642_v25 = vpop.f32.mrf.mxu2 }
  0xc2   : > { %v703_v19 = vmax.f32 %v695_v16, 0.0  ;;  %v641_v20 = vadd.f32 %v640_v9, %v612_v17  ;;  %v613_v21 = vpop.f32.mrf.mxu1 }
  0xc4   : > { %v711_v22 = vpack.c.bf16 %v703_v19, %v703_v19  ;;  %v654_v23 = vadd.f32 %v641_v20, %v326_v18 }
  0xc5   : > { %v672_v24 = vld [vmem:[#allocation2 + $0x18] sm:$0xff] }
  0xc6   : > { %720 = vst.msk [vmem:[%s1254_s22 + $0x8] sm:$0xf] %vm717_vm1, %v711_v22  ;;  %v684_v26 = vmul.f32 %v1240_v6, %v672_v24 }
  0xc7   : > { %662 = vst.msk [vmem:[#allocation2 + $0x20] sm:$0xff] %vm313_vm0, %v654_v23  ;;  %v584_v29 = vpop.f32.mrf.mxu3 }
  0xc8   : > { %v696_v30 = vadd.f32 %v1245_v10, %v684_v26  ;;  %v614_v32 = vadd.f32 %v613_v21, %v584_v29 }
  0xc9   : > { %v601_v27 = vpop.f32.mrf.mxu0  ;;  %v645_v44 = vpop.f32.mrf.mxu2 }
  0xca   : > { %v602_v28 = vadd.f32 %v601_v27, %v572_v1  ;;  %v704_v35 = vmax.f32 %v696_v30, 0.0  ;;  %v643_v36 = vadd.f32 %v642_v25, %v614_v32  ;;  %v616_v40 = vpop.f32.mrf.mxu1 }
  0xcc   : > { %v631_v33 = vadd.f32 %v630_v55, %v602_v28  ;;  %v712_v38 = vpack.c.bf16 %v704_v35, %v704_v35  ;;  %v655_v39 = vadd.f32 %v643_v36, %v327_v34 }
  0xce   : > { %v650_v37 = vadd.f32 %v631_v33, %v322_v31  ;;  %721 = vst.msk [vmem:[%s1254_s22 + $0xc] sm:$0xf] %vm717_vm1, %v712_v38  ;;  %v673_v41 = vld [vmem:[#allocation2 + $0x20] sm:$0xff] }
  0xcf   : > { %v685_v43 = vmul.f32 %v1240_v6, %v673_v41  ;;  %663 = vst.msk [vmem:[#allocation2 + $0x28] sm:$0xff] %vm313_vm0, %v655_v39  ;;  %v587_v46 = vpop.f32.mrf.mxu3 }
  0xd0   : > { %658 = vst.msk [vmem:[#allocation2] sm:$0xff] %vm313_vm0, %v650_v37  ;;  %v617_v48 = vadd.f32 %v616_v40, %v587_v46 }
  0xd1   : > { %v603_v42 = vpop.f32.mrf.mxu0  ;;  %v697_v49 = vadd.f32 %v1245_v10, %v685_v43  ;;  %v647_v3 = vpop.f32.mrf.mxu2 }
  0xd2   : > { %v604_v45 = vadd.f32 %v603_v42, %v574_v12  ;;  %v646_v52 = vadd.f32 %v645_v44, %v617_v48  ;;  %v618_v62 = vpop.f32.mrf.mxu1 }
  0xd3   : > { %v705_v53 = vmax.f32 %v697_v49, 0.0 }
  0xd4   : > { %v633_v50 = vadd.f32 %v1234_v56, %v604_v45  ;;  %v656_v57 = vadd.f32 %v646_v52, %v328_v51 }
  0xd5   : > { %v713_v58 = vpack.c.bf16 %v705_v53, %v705_v53 }
  0xd6   : > { %v651_v54 = vadd.f32 %v633_v50, %v323_v47  ;;  %v674_v60 = vld [vmem:[#allocation2 + $0x28] sm:$0xff]  ;;  %664 = vst.msk [vmem:[#allocation2 + $0x30] sm:$0xff] %vm313_vm0, %v656_v57 }
  0xd7   : > { %v669_v55 = vld [vmem:[#allocation2] sm:$0xff]  ;;  %722 = vst.msk [vmem:[%s1254_s22 + $0x10] sm:$0xf] %vm717_vm1, %v713_v58  ;;  %v686_v56 = vmul.f32 %v1240_v6, %v674_v60  ;;  %v589_v63 = vpop.f32.mrf.mxu3 }
  0xd8   : > { %v681_v59 = vmul.f32 %v1240_v6, %v669_v55  ;;  %659 = vst.msk [vmem:[#allocation2 + $0x8] sm:$0xff] %vm313_vm0, %v651_v54  ;;  %v619_v0 = vadd.f32 %v618_v62, %v589_v63 }
  0xd9   : > { %v698_v2 = vadd.f32 %v1245_v10, %v686_v56 }
  0xda   : > { %v693_v61 = vadd.f32 %v1245_v10, %v681_v59  ;;  %v648_v5 = vadd.f32 %v647_v3, %v619_v0 }
  0xdb   : > { %v706_v8 = vmax.f32 %v698_v2, 0.0 }
  0xdc   : > { %v701_v1 = vmax.f32 %v693_v61, 0.0  ;;  %v657_v11 = vadd.f32 %v648_v5, %v329_v4 }
  0xdd   : > { %v714_v12 = vpack.c.bf16 %v706_v8, %v706_v8  ;;  %v675_v14 = vld [vmem:[#allocation2 + $0x30] sm:$0xff] }
  0xde   : > { %v709_v7 = vpack.c.bf16 %v701_v1, %v701_v1  ;;  %v687_v15 = vmul.f32 %v1240_v6, %v675_v14  ;;  %665 = vst.msk [vmem:[#allocation2 + $0x38] sm:$0xff] %vm313_vm0, %v657_v11 }
  0xdf   : > { %v670_v9 = vld [vmem:[#allocation2 + $0x8] sm:$0xff]  ;;  %723 = vst.msk [vmem:[%s1254_s22 + $0x14] sm:$0xf] %vm717_vm1, %v714_v12 }
  0xe0   : > { %718 = vst.msk [vmem:[%s1254_s22] sm:$0xf] %vm717_vm1, %v709_v7  ;;  %v682_v13 = vmul.f32 %v1240_v6, %v670_v9  ;;  %v699_v17 = vadd.f32 %v1245_v10, %v687_v15 }
  0xe2   : > { %v694_v16 = vadd.f32 %v1245_v10, %v682_v13  ;;  %v707_v19 = vmax.f32 %v699_v17, 0.0 }
  0xe4   : > { %v702_v18 = vmax.f32 %v694_v16, 0.0  ;;  %v715_v21 = vpack.c.bf16 %v707_v19, %v707_v19 }
  0xe5   : > { %v676_v22 = vld [vmem:[#allocation2 + $0x38] sm:$0xff] }
  0xe6   : > { %v710_v20 = vpack.c.bf16 %v702_v18, %v702_v18  ;;  %724 = vst.msk [vmem:[%s1254_s22 + $0x18] sm:$0xf] %vm717_vm1, %v715_v21  ;;  %v688_v23 = vmul.f32 %v1240_v6, %v676_v22 }
  0xe8   : > { %719 = vst.msk [vmem:[%s1254_s22 + $0x4] sm:$0xf] %vm717_vm1, %v710_v20  ;;  %v700_v24 = vadd.f32 %v1245_v10, %v688_v23 }
  0xea   : > { %v708_v25 = vmax.f32 %v700_v24, 0.0 }
  0xec   : > { %v716_v26 = vpack.c.bf16 %v708_v25, %v708_v25 }
  0xee   : > { %725 = vst.msk [vmem:[%s1254_s22 + $0x1c] sm:$0xf] %vm717_vm1, %v716_v26 }
  0xef PF: > { %s14_s17 = sadd.s32 1, %s1086_s17   ;;  %s1307_s15 = smov %s1082_s16 }
  0xf0   : > { %p11_p5 = scmp.ge.s32.totalorder %s14_s17, 4   ;;  %s1308_s16 = smov %s1310_s18 }
  0xf2   :  { %13 = sbr.rel (!%p11_p5) target bundleno = 2 (0x2), region = 83 }

</bundles_post_ra>
